<compile_context>
chip_gen: v7x
topology: tpu7x:2x2x1
jax: 0.10.0
libtpu: 0.0.40
codegen_flags: <defaults>
</compile_context>

<pallas_src>
import functools

import jax
import jax.numpy as jnp
import numpy as np
from jax import lax
from jax.experimental import pallas as pl
from jax.experimental.pallas import tpu as pltpu


def _round_up(x, m):
    return ((x + m - 1) // m) * m


# ----------------------------------------------------------------------------
# Synthetic encoder: Conv3x3 / stride 2 / pad 1 + ReLU + per-descriptor L2 norm
# TODO(synk): encoder architecture is unspecified in the torch module
# (models.make); Conv3x3-s2 + ReLU stand-in with deterministic weights is used.
# TODO(synk): im2col stays in XLA (for stride 2 it is a 2.25x -- not 9x -- HBM
# blow-up, ~25% of encoder traffic); fully fusing it requires strided in-kernel
# gathers of the NHWC image that Mosaic may refuse to lower -- revisit with
# manual make_async_copy row-strip DMAs.
# ----------------------------------------------------------------------------
def _extract_patches_3x3_s2(x):
    """x: (N, H, W, C) NHWC -> (N, OH, OW, 9*C) im2col patches (k=3,s=2,p=1)."""
    N, H, W, C = x.shape
    xp = jnp.pad(x, ((0, 0), (1, 1), (1, 1), (0, 0)))
    OH = (H + 2 - 3) // 2 + 1
    OW = (W + 2 - 3) // 2 + 1
    pats = []
    for dh in range(3):
        for dw in range(3):
            pats.append(xp[:, dh:dh + 2 * OH:2, dw:dw + 2 * OW:2, :])
    return jnp.concatenate(pats, axis=-1)


def _conv_relu_norm_kernel(p_ref, w_ref, b_ref, o_ref):
    # p: (tm, Kp) bf16   w: (Kp, c_pad) bf16   b: (1, c_pad) f32
    # o: (tm, c_pad) bf16 -- L2-normalized descriptors, lane-dense (128).
    acc = jnp.dot(p_ref[...], w_ref[...], preferred_element_type=jnp.float32)
    act = jnp.maximum(acc + b_ref[...], 0.0)
    # Padded channels have zero weight & bias -> contribute 0 to the norm.
    inv = lax.rsqrt(jnp.sum(act * act, axis=-1, keepdims=True) + 1e-12)
    o_ref[...] = (act * inv).astype(o_ref.dtype)


def conv_relu_encoder(x_nhwc, w, b, *, tile_m=4096):
    """x_nhwc: (N,H,W,C); w: (3,3,C,D) HWIO; b: (D,).

    Returns (N, OH, OW, c_pad) bf16 L2-normalized descriptors; channels
    [D:c_pad) are exactly zero (c_pad = D rounded up to 128)."""
    patches = _extract_patches_3x3_s2(x_nhwc)
    N, OH, OW, K = patches.shape
    D = w.shape[-1]
    c_pad = _round_up(D, 128)
    Kp = _round_up(K, 32)
    M = N * OH * OW
    tm = min(tile_m, _round_up(M, 8))
    tm = max(8, (tm // 8) * 8)
    M_pad = _round_up(M, tm)
    p2 = patches.reshape(M, K).astype(jnp.bfloat16)        # bf16 im2col buffer
    p2 = jnp.pad(p2, ((0, M_pad - M), (0, Kp - K)))
    w2 = jnp.pad(w.reshape(K, D).astype(jnp.bfloat16),
                 ((0, Kp - K), (0, c_pad - D)))
    b2 = jnp.pad(b.astype(jnp.float32), (0, c_pad - D)).reshape(1, c_pad)
    vmem = (2 * (tm * Kp * 2 + tm * c_pad * 2) + Kp * c_pad * 2 + c_pad * 4
            + 3 * tm * c_pad * 4)
    vmem = int(min(max(2 * vmem, 16 * 1024 * 1024), 64 * 1024 * 1024))
    out = pl.pallas_call(
        _conv_relu_norm_kernel,
        out_shape=jax.ShapeDtypeStruct((M_pad, c_pad), jnp.bfloat16),
        grid=(M_pad // tm,),
        in_specs=[
            pl.BlockSpec((tm, Kp), lambda i: (i, 0)),     # row-tiled, pipelined
            pl.BlockSpec((Kp, c_pad), lambda i: (0, 0)),  # weights resident
            pl.BlockSpec((1, c_pad), lambda i: (0, 0)),   # bias resident
        ],
        out_specs=pl.BlockSpec((tm, c_pad), lambda i: (i, 0)),
        compiler_params=pltpu.CompilerParams(
            dimension_semantics=("parallel",),
            vmem_limit_bytes=vmem),
    )(p2, w2, b2)
    return out[:M].reshape(N, OH, OW, c_pad)


# ----------------------------------------------------------------------------
# dense_match_similarity: grid = (episode batch, query tiles, way)
#   - way is the innermost 'arbitrary' axis; the output / scratch accumulate
#     per-way columns, the query block stays resident across it, and only one
#     way's support block is in VMEM at a time (v7x friendly).
# ----------------------------------------------------------------------------
def dense_match_similarity(q_feat, s_feat, *, way, hw, tq, s_hw, s_pad,
                           neighbor_k):
    """q_feat: (b, q_rows, c_pad) bf16 normalized query descriptors
       s_feat: (b, way, s_pad, c_pad) bf16 normalized support descriptors
               (rows beyond s_hw are zero and masked in-kernel).
       Returns (b, q_rows//hw, way) float32 logits."""
    b, q_rows, c_pad = q_feat.shape
    mq = tq * hw
    assert q_rows % mq == 0
    n_qt = q_rows // mq
    q_pad = n_qt * tq
    inv_k = 1.0 / neighbor_k
    mask_cols = s_pad > s_hw

    def kernel(q_ref, s_ref, o_ref, acc_ref):
        wi = pl.program_id(2)

        @pl.when(wi == 0)
        def _init():
            acc_ref[...] = jnp.zeros_like(acc_ref)

        q = q_ref[0]                     # (mq, c_pad) bf16, pre-normalized
        s = s_ref[0, 0]                  # (s_pad, c_pad) bf16, pre-normalized
        # One MXU matmul per (query tile, way): cosine similarities.
        scores = lax.dot_general(q, s, (((1,), (1,)), ((), ())),
                                 preferred_element_type=jnp.float32)
        if mask_cols:                    # single additive bias row (pad cols)
            col = lax.broadcasted_iota(jnp.int32, (1, s_pad), 1)
            scores = scores + jnp.where(col < s_hw, 0.0, -1e30)
        total = jnp.zeros((mq, 1), jnp.float32)
        run = scores
        for _ in range(neighbor_k):      # iterative top-k on the f32 slab
            m = jnp.max(run, axis=-1, keepdims=True)
            total = total + m
            # TODO(synk): exact float ties are all masked in one step, unlike
            # torch.topk which counts duplicate values separately.
            run = jnp.where(run >= m, -jnp.inf, run)
        sim_local = total * inv_k                                   # (mq, 1)
        # torch: sim_way = sum(sim_local over the hw query positions) -- fused.
        sim_way = jnp.sum(sim_local.reshape(tq, hw), axis=1, keepdims=True)
        onehot = (lax.broadcasted_iota(jnp.int32, (1, way), 1) == wi)
        acc_ref[...] += sim_way * onehot.astype(jnp.float32)        # (tq, way)
        o_ref[0] = acc_ref[...]

    vmem = (2 * (mq * c_pad * 2 + s_pad * c_pad * 2 + tq * way * 4)
            + 3 * mq * s_pad * 4 + tq * way * 4)
    vmem = int(min(max(2 * vmem, 16 * 1024 * 1024), 64 * 1024 * 1024))
    # TODO(synk): for very large hw*s_hw the (mq, s_pad) f32 score slab should
    # be streamed in s_pad chunks with a running in-kernel top-k (v7x 64 MiB).
    return pl.pallas_call(
        kernel,
        out_shape=jax.ShapeDtypeStruct((b, q_pad, way), jnp.float32),
        grid=(b, n_qt, way),             # way innermost: accumulator axis
        in_specs=[
            # query tile resident across the way axis (index_map ignores k)
            pl.BlockSpec((1, mq, c_pad), lambda i, j, k: (i, j, 0)),
            # one way's support block per step -> small, streamed, bf16
            pl.BlockSpec((1, 1, s_pad, c_pad), lambda i, j, k: (i, k, 0, 0)),
        ],
        out_specs=pl.BlockSpec((1, tq, way), lambda i, j, k: (i, j, 0)),
        scratch_shapes=[pltpu.VMEM((tq, way), jnp.float32)],
        compiler_params=pltpu.CompilerParams(
            dimension_semantics=("parallel", "parallel", "arbitrary"),
            vmem_limit_bytes=vmem),
    )(q_feat, s_feat)


# ----------------------------------------------------------------------------
# MetaBaseline forward (method='dense_match')
# ----------------------------------------------------------------------------
def meta_baseline_dense_forward(params, x_shot, x_query, neighbor_k=5,
                                encoder_tile_m=4096):
    b, way, shot, C, H, W = x_shot.shape
    q_num = x_query.shape[1]
    xs = x_shot.reshape(b * way * shot, C, H, W)
    xq = x_query.reshape(b * q_num, C, H, W)
    x_tot = jnp.transpose(jnp.concatenate([xs, xq], axis=0), (0, 2, 3, 1))
    feat = conv_relu_encoder(x_tot, params["w"], params["b"],
                             tile_m=encoder_tile_m)  # (N, fh, fw, c_pad) bf16
    n_shot = b * way * shot
    fh, fw, c_pad = feat.shape[1], feat.shape[2], feat.shape[3]
    hw = fh * fw
    s_hw = shot * hw
    assert neighbor_k <= s_hw            # torch.topk would raise otherwise
    s_pad = _round_up(s_hw, 128)
    # Query row tile sized for the MXU: mq = tq*hw >= 256, tq a multiple of 8.
    tq = max(8, _round_up(pl.cdiv(256, hw), 8))
    q_pad = _round_up(q_num, tq)
    # channel-last descriptors, flattened exactly like the torch permute+view
    f_shot = feat[:n_shot].reshape(b, way, s_hw, c_pad)
    f_shot = jnp.pad(f_shot, ((0, 0), (0, 0), (0, s_pad - s_hw), (0, 0)))
    f_query = feat[n_shot:].reshape(b, q_num, hw, c_pad)
    f_query = jnp.pad(f_query, ((0, 0), (0, q_pad - q_num), (0, 0), (0, 0)))
    f_query = f_query.reshape(b, q_pad * hw, c_pad)  # (8,128)-aligned rows
    # (x_shot_pool / x_query_pool in torch are computed but unused on this path)
    sim = dense_match_similarity(f_query, f_shot, way=way, hw=hw, tq=tq,
                                 s_hw=s_hw, s_pad=s_pad, neighbor_k=neighbor_k)
    return sim[:, :q_num, :]


# ----------------------------------------------------------------------------
# Pure-JAX f32 reference (mirrors the torch code) for verification
# ----------------------------------------------------------------------------
def reference_forward(params, x_shot, x_query, neighbor_k):
    b, way, shot, C, H, W = x_shot.shape
    q_num = x_query.shape[1]
    xs = x_shot.reshape(b * way * shot, C, H, W)
    xq = x_query.reshape(b * q_num, C, H, W)
    x_tot = jnp.transpose(jnp.concatenate([xs, xq], axis=0), (0, 2, 3, 1))
    patches = _extract_patches_3x3_s2(x_tot)
    N, OH, OW, K = patches.shape
    D = params["w"].shape[-1]
    feat = jnp.maximum(
        patches.reshape(N * OH * OW, K) @ params["w"].reshape(K, D)
        + params["b"][None, :], 0.0).reshape(N, OH, OW, D)
    n_shot = b * way * shot
    f_shot = feat[:n_shot].reshape(b, way, shot * OH * OW, D)
    f_query = feat[n_shot:].reshape(b, q_num, OH * OW, D)
    qn = f_query * lax.rsqrt(jnp.sum(f_query * f_query, -1, keepdims=True) + 1e-12)
    sn = f_shot * lax.rsqrt(jnp.sum(f_shot * f_shot, -1, keepdims=True) + 1e-12)
    scores = jnp.einsum("bqpc,bwsc->bqwps", qn, sn)   # (b, q, way, hw, shot*hw)
    topv, _ = lax.top_k(scores, neighbor_k)
    sim_local = jnp.sum(topv, axis=-1) / neighbor_k   # (b, q, way, hw)
    return jnp.sum(sim_local, axis=-1)                # (b, q, way)


if __name__ == "__main__":
    key = jax.random.PRNGKey(0)
    b, way, shot, q_num = 2, 3, 2, 4
    C_in, H, W, D = 3, 8, 8, 32
    neighbor_k = 5

    k1, k2, k3, k4 = jax.random.split(key, 4)
    x_shot = jax.random.normal(k1, (b, way, shot, C_in, H, W), dtype=jnp.float32)
    x_query = jax.random.normal(k2, (b, q_num, C_in, H, W), dtype=jnp.float32)
    params = {
        "w": 0.1 * jax.random.normal(k3, (3, 3, C_in, D), dtype=jnp.float32),
        "b": 0.01 * jax.random.normal(k4, (D,), dtype=jnp.float32),
        # temp=10.0 (learnable in torch) is unused on the dense_match path.
    }

    # encoder_tile_m=128 only so the tiny test exercises a multi-step encoder
    # grid; the default (4096) is the recommended setting for real shapes.
    fwd = jax.jit(functools.partial(meta_baseline_dense_forward,
                                    neighbor_k=neighbor_k, encoder_tile_m=128))
    logits = jax.block_until_ready(fwd(params, x_shot, x_query))

    ref = reference_forward(params, x_shot, x_query, neighbor_k)
    np.testing.assert_allclose(np.asarray(logits), np.asarray(ref),
                               rtol=5e-2, atol=5e-2)
    assert logits.shape == (b, q_num, way)
    print("KERNEL_OK")
</pallas_src>

<mosaic_0001>
module attributes {stable_mosaic.version = 11 : i64} {
  func.func @_conv_relu_norm_kernel(%arg0: i32, %arg1: memref<128x32xbf16, #tpu.memory_space<vmem>>, %arg2: memref<32x128xbf16, #tpu.memory_space<vmem>>, %arg3: memref<1x128xf32, #tpu.memory_space<vmem>>, %arg4: memref<128x128xbf16, #tpu.memory_space<vmem>>) attributes {dimension_semantics = [#tpu.dimension_semantics<parallel>], iteration_bounds = array<i64: 3>, scalar_prefetch = 0 : i64, scratch_operands = 0 : i64, tpu.core_type = #tpu.core_type<tc>, window_params = [{transform_indices = @transform_0, window_bounds = array<i64: 128, 32>}, {pipeline_mode = #tpu.pipeline_mode<synchronous>, transform_indices = @transform_1, window_bounds = array<i64: 32, 128>}, {pipeline_mode = #tpu.pipeline_mode<synchronous>, transform_indices = @transform_2, window_bounds = array<i64: 1, 128>}, {transform_indices = @transform_3, window_bounds = array<i64: 128, 128>}]} {
    %c0 = arith.constant 0 : index
    %c0_0 = arith.constant 0 : index
    %0 = vector.load %arg1[%c0, %c0_0] : memref<128x32xbf16, #tpu.memory_space<vmem>>, vector<128x32xbf16>
    %c0_1 = arith.constant 0 : index
    %c0_2 = arith.constant 0 : index
    %1 = vector.load %arg2[%c0_1, %c0_2] : memref<32x128xbf16, #tpu.memory_space<vmem>>, vector<32x128xbf16>
    %cst = arith.constant dense<0.000000e+00> : vector<128x128xf32>
    %2 = tpu.matmul %0, %1, %cst {dimension_numbers = #tpu.dot_dimension_numbers<[1], [0], [0], [1], [0, 0, 1, 1], [], []>} : vector<128x32xbf16>, vector<32x128xbf16>, vector<128x128xf32> -> vector<128x128xf32>
    %c0_3 = arith.constant 0 : index
    %c0_4 = arith.constant 0 : index
    %3 = vector.load %arg3[%c0_3, %c0_4] : memref<1x128xf32, #tpu.memory_space<vmem>>, vector<1x128xf32>
    %4 = vector.broadcast %3 : vector<1x128xf32> to vector<128x128xf32>
    %5 = arith.addf %2, %4 : vector<128x128xf32>
    %cst_5 = arith.constant 0.000000e+00 : f32
    %6 = vector.broadcast %cst_5 : f32 to vector<128x128xf32>
    %7 = arith.maximumf %5, %6 : vector<128x128xf32>
    %8 = arith.mulf %7, %7 : vector<128x128xf32>
    %cst_6 = arith.constant dense<0.000000e+00> : vector<128xf32>
    %9 = vector.multi_reduction <add>, %8, %cst_6 [1] : vector<128x128xf32> to vector<128xf32>
    %10 = vector.shape_cast %9 : vector<128xf32> to vector<128x1xf32>
    %cst_7 = arith.constant 9.99999996E-13 : f32
    %11 = vector.broadcast %cst_7 : f32 to vector<128x1xf32>
    %12 = arith.addf %10, %11 : vector<128x1xf32>
    %13 = math.rsqrt %12 : vector<128x1xf32>
    %14 = vector.broadcast %13 : vector<128x1xf32> to vector<128x128xf32>
    %15 = arith.mulf %7, %14 : vector<128x128xf32>
    %16 = arith.truncf %15 : vector<128x128xf32> to vector<128x128xbf16>
    %c0_8 = arith.constant 0 : index
    %c0_9 = arith.constant 0 : index
    %17 = vector.load %arg4[%c0_8, %c0_9] : memref<128x128xbf16, #tpu.memory_space<vmem>>, vector<128x128xbf16>
    tpu.vector_store %arg4[%c0_8, %c0_9], %16 {strides = array<i32>} : memref<128x128xbf16, #tpu.memory_space<vmem>>, vector<128x128xbf16>,
    return
  }
  func.func @transform_0(%arg0: i32) -> (i32, i32) {
    %c0_i32 = arith.constant 0 : i32
    %c0_i32_0 = arith.constant 0 : i32
    return %arg0, %c0_i32 : i32, i32
  }
  func.func @transform_1(%arg0: i32) -> (i32, i32) {
    %c0_i32 = arith.constant 0 : i32
    %c0_i32_0 = arith.constant 0 : i32
    %c0_i32_1 = arith.constant 0 : i32
    return %c0_i32, %c0_i32_0 : i32, i32
  }
  func.func @transform_2(%arg0: i32) -> (i32, i32) {
    %c0_i32 = arith.constant 0 : i32
    %c0_i32_0 = arith.constant 0 : i32
    %c0_i32_1 = arith.constant 0 : i32
    return %c0_i32, %c0_i32_0 : i32, i32
  }
  func.func @transform_3(%arg0: i32) -> (i32, i32) {
    %c0_i32 = arith.constant 0 : i32
    %c0_i32_0 = arith.constant 0 : i32
    return %arg0, %c0_i32 : i32, i32
  }
}

module attributes {stable_mosaic.version = 11 : i64} {
  func.func @kernel(%arg0: i32, %arg1: i32, %arg2: i32, %arg3: memref<1x256x128xbf16, #tpu.memory_space<vmem>>, %arg4: memref<1x1x128x128xbf16, #tpu.memory_space<vmem>>, %arg5: memref<1x16x3xf32, #tpu.memory_space<vmem>>, %arg6: memref<16x3xf32, #tpu.memory_space<vmem>>) attributes {dimension_semantics = [#tpu.dimension_semantics<parallel>, #tpu.dimension_semantics<parallel>, #tpu.dimension_semantics<arbitrary>], iteration_bounds = array<i64: 2, 1, 3>, scalar_prefetch = 0 : i64, scratch_operands = 1 : i64, tpu.core_type = #tpu.core_type<tc>, window_params = [{transform_indices = @transform_0, window_bounds = array<i64: 1, 256, 128>}, {transform_indices = @transform_1, window_bounds = array<i64: 1, 1, 128, 128>}, {transform_indices = @transform_2, window_bounds = array<i64: 1, 16, 3>}]} {
    %c0_i32 = arith.constant 0 : i32
    %0 = arith.cmpi eq, %arg2, %c0_i32 : i32
    %1 = arith.extui %0 : i1 to i32
    %c0_i32_0 = arith.constant 0 : i32
    %2 = arith.cmpi ne, %1, %c0_i32_0 : i32
    scf.if %2 {
      %cst_30 = arith.constant 0.000000e+00 : f32
      %68 = vector.broadcast %cst_30 : f32 to vector<16x3xf32>
      %c0_31 = arith.constant 0 : index
      %c0_32 = arith.constant 0 : index
      %69 = vector.load %arg6[%c0_31, %c0_32] : memref<16x3xf32, #tpu.memory_space<vmem>>, vector<16x3xf32>
      tpu.vector_store %arg6[%c0_31, %c0_32], %68 {strides = array<i32>} : memref<16x3xf32, #tpu.memory_space<vmem>>, vector<16x3xf32>,
    } else {
    }
    %c0 = arith.constant 0 : index
    %c0_1 = arith.constant 0 : index
    %c0_2 = arith.constant 0 : index
    %3 = vector.load %arg3[%c0, %c0_1, %c0_2] : memref<1x256x128xbf16, #tpu.memory_space<vmem>>, vector<1x256x128xbf16>
    %4 = vector.shape_cast %3 : vector<1x256x128xbf16> to vector<256x128xbf16>
    %c0_3 = arith.constant 0 : index
    %c0_4 = arith.constant 0 : index
    %c0_5 = arith.constant 0 : index
    %c0_6 = arith.constant 0 : index
    %5 = vector.load %arg4[%c0_3, %c0_4, %c0_5, %c0_6] : memref<1x1x128x128xbf16, #tpu.memory_space<vmem>>, vector<1x1x128x128xbf16>
    %6 = vector.shape_cast %5 : vector<1x1x128x128xbf16> to vector<128x128xbf16>
    %cst = arith.constant dense<0.000000e+00> : vector<256x128xf32>
    %7 = tpu.matmul %4, %6, %cst {dimension_numbers = #tpu.dot_dimension_numbers<[1], [1], [0], [0], [0, 0, 1, 0], [], []>} : vector<256x128xbf16>, vector<128x128xbf16>, vector<256x128xf32> -> vector<256x128xf32>
    %8 = tpu.iota {dimensions = array<i32: 1>} : vector<1x128xi32>
    %c32_i32 = arith.constant 32 : i32
    %9 = vector.broadcast %c32_i32 : i32 to vector<1x128xi32>
    %10 = arith.cmpi slt, %8, %9 : vector<1x128xi32>
    %cst_7 = arith.constant 0.000000e+00 : f32
    %cst_8 = arith.constant -1.000000e+30 : f32
    %11 = vector.broadcast %cst_7 : f32 to vector<1x128xf32>
    %12 = vector.broadcast %cst_8 : f32 to vector<1x128xf32>
    %13 = arith.select %10, %11, %12 : vector<1x128xi1>, vector<1x128xf32>
    %14 = vector.broadcast %13 : vector<1x128xf32> to vector<256x128xf32>
    %15 = arith.addf %7, %14 : vector<256x128xf32>
    %cst_9 = arith.constant 0.000000e+00 : f32
    %16 = vector.broadcast %cst_9 : f32 to vector<256x1xf32>
    %cst_10 = arith.constant dense<0xFF800000> : vector<256xf32>
    %17 = vector.multi_reduction <maximumf>, %15, %cst_10 [1] : vector<256x128xf32> to vector<256xf32>
    %18 = vector.shape_cast %17 : vector<256xf32> to vector<256x1xf32>
    %19 = arith.addf %16, %18 : vector<256x1xf32>
    %20 = vector.broadcast %18 : vector<256x1xf32> to vector<256x128xf32>
    %21 = arith.cmpf oge, %15, %20 : vector<256x128xf32>
    %cst_11 = arith.constant 0xFF800000 : f32
    %22 = vector.broadcast %cst_11 : f32 to vector<256x128xf32>
    %23 = arith.select %21, %22, %15 : vector<256x128xi1>, vector<256x128xf32>
    %cst_12 = arith.constant dense<0xFF800000> : vector<256xf32>
    %24 = vector.multi_reduction <maximumf>, %23, %cst_12 [1] : vector<256x128xf32> to vector<256xf32>
    %25 = vector.shape_cast %24 : vector<256xf32> to vector<256x1xf32>
    %26 = arith.addf %19, %25 : vector<256x1xf32>
    %27 = vector.broadcast %25 : vector<256x1xf32> to vector<256x128xf32>
    %28 = arith.cmpf oge, %23, %27 : vector<256x128xf32>
    %cst_13 = arith.constant 0xFF800000 : f32
    %29 = vector.broadcast %cst_13 : f32 to vector<256x128xf32>
    %30 = arith.select %28, %29, %23 : vector<256x128xi1>, vector<256x128xf32>
    %cst_14 = arith.constant dense<0xFF800000> : vector<256xf32>
    %31 = vector.multi_reduction <maximumf>, %30, %cst_14 [1] : vector<256x128xf32> to vector<256xf32>
    %32 = vector.shape_cast %31 : vector<256xf32> to vector<256x1xf32>
    %33 = arith.addf %26, %32 : vector<256x1xf32>
    %34 = vector.broadcast %32 : vector<256x1xf32> to vector<256x128xf32>
    %35 = arith.cmpf oge, %30, %34 : vector<256x128xf32>
    %cst_15 = arith.constant 0xFF800000 : f32
    %36 = vector.broadcast %cst_15 : f32 to vector<256x128xf32>
    %37 = arith.select %35, %36, %30 : vector<256x128xi1>, vector<256x128xf32>
    %cst_16 = arith.constant dense<0xFF800000> : vector<256xf32>
    %38 = vector.multi_reduction <maximumf>, %37, %cst_16 [1] : vector<256x128xf32> to vector<256xf32>
    %39 = vector.shape_cast %38 : vector<256xf32> to vector<256x1xf32>
    %40 = arith.addf %33, %39 : vector<256x1xf32>
    %41 = vector.broadcast %39 : vector<256x1xf32> to vector<256x128xf32>
    %42 = arith.cmpf oge, %37, %41 : vector<256x128xf32>
    %cst_17 = arith.constant 0xFF800000 : f32
    %43 = vector.broadcast %cst_17 : f32 to vector<256x128xf32>
    %44 = arith.select %42, %43, %37 : vector<256x128xi1>, vector<256x128xf32>
    %cst_18 = arith.constant dense<0xFF800000> : vector<256xf32>
    %45 = vector.multi_reduction <maximumf>, %44, %cst_18 [1] : vector<256x128xf32> to vector<256xf32>
    %46 = vector.shape_cast %45 : vector<256xf32> to vector<256x1xf32>
    %47 = arith.addf %40, %46 : vector<256x1xf32>
    %cst_19 = arith.constant 2.000000e-01 : f32
    %48 = vector.broadcast %cst_19 : f32 to vector<256x1xf32>
    %49 = arith.mulf %47, %48 : vector<256x1xf32>
    %50 = vector.shape_cast %49 : vector<256x1xf32> to vector<16x16xf32>
    %cst_20 = arith.constant dense<0.000000e+00> : vector<16xf32>
    %51 = vector.multi_reduction <add>, %50, %cst_20 [1] : vector<16x16xf32> to vector<16xf32>
    %52 = vector.shape_cast %51 : vector<16xf32> to vector<16x1xf32>
    %53 = tpu.iota {dimensions = array<i32: 1>} : vector<1x3xi32>
    %54 = vector.broadcast %arg2 : i32 to vector<1x3xi32>
    %55 = arith.cmpi eq, %53, %54 : vector<1x3xi32>
    %c0_21 = arith.constant 0 : index
    %c0_22 = arith.constant 0 : index
    %56 = vector.load %arg6[%c0_21, %c0_22] : memref<16x3xf32, #tpu.memory_space<vmem>>, vector<16x3xf32>
    %57 = arith.extui %55 : vector<1x3xi1> to vector<1x3xi32>
    %58 = arith.sitofp %57 : vector<1x3xi32> to vector<1x3xf32>
    %59 = vector.broadcast %52 : vector<16x1xf32> to vector<16x3xf32>
    %60 = vector.broadcast %58 : vector<1x3xf32> to vector<16x3xf32>
    %61 = arith.mulf %59, %60 : vector<16x3xf32>
    %62 = arith.addf %56, %61 : vector<16x3xf32>
    %c0_23 = arith.constant 0 : index
    %c0_24 = arith.constant 0 : index
    %63 = vector.load %arg6[%c0_23, %c0_24] : memref<16x3xf32, #tpu.memory_space<vmem>>, vector<16x3xf32>
    tpu.vector_store %arg6[%c0_23, %c0_24], %62 {strides = array<i32>} : memref<16x3xf32, #tpu.memory_space<vmem>>, vector<16x3xf32>,
    %c0_25 = arith.constant 0 : index
    %c0_26 = arith.constant 0 : index
    %64 = vector.load %arg6[%c0_25, %c0_26] : memref<16x3xf32, #tpu.memory_space<vmem>>, vector<16x3xf32>
    %c0_27 = arith.constant 0 : index
    %c0_28 = arith.constant 0 : index
    %c0_29 = arith.constant 0 : index
    %65 = vector.load %arg5[%c0_27, %c0_28, %c0_29] : memref<1x16x3xf32, #tpu.memory_space<vmem>>, vector<1x16x3xf32>
    %66 = vector.shape_cast %65 : vector<1x16x3xf32> to vector<16x3xf32>
    %67 = vector.shape_cast %64 : vector<16x3xf32> to vector<1x16x3xf32>
    tpu.vector_store %arg5[%c0_27, %c0_28, %c0_29], %67 {strides = array<i32>} : memref<1x16x3xf32, #tpu.memory_space<vmem>>, vector<1x16x3xf32>,
    return
  }
  func.func @transform_0(%arg0: i32, %arg1: i32, %arg2: i32) -> (i32, i32, i32) {
    %c0_i32 = arith.constant 0 : i32
    %c0_i32_0 = arith.constant 0 : i32
    return %arg0, %arg1, %c0_i32 : i32, i32, i32
  }
  func.func @transform_1(%arg0: i32, %arg1: i32, %arg2: i32) -> (i32, i32, i32, i32) {
    %c0_i32 = arith.constant 0 : i32
    %c0_i32_0 = arith.constant 0 : i32
    %c0_i32_1 = arith.constant 0 : i32
    return %arg0, %arg2, %c0_i32, %c0_i32_0 : i32, i32, i32, i32
  }
  func.func @transform_2(%arg0: i32, %arg1: i32, %arg2: i32) -> (i32, i32, i32) {
    %c0_i32 = arith.constant 0 : i32
    %c0_i32_0 = arith.constant 0 : i32
    return %arg0, %arg1, %c0_i32 : i32, i32, i32
  }
}

</mosaic_0001>

<bundles_post_ra>
// kernel: meta_baseline_dense_forward.2
= control target key start
LH: loop header
LB: loop body
LE: loop exit
PB: predicated region body
PF: predicated region fallthrough
CT: control target
= control target key end

     0   :  { %s845_s12 = smov 0   ;;  %s994_s0 = inlined_call_operand.vmem [shape: bf16[384,32], index: 0, kind: input, shape index: {}]   ;;  %s995_s1 = inlined_call_operand.vmem [shape: bf16[32,128], index: 1, kind: input, shape index: {}]   ;;  %s996_s2 = inlined_call_operand.vmem [shape: f32[1,128], index: 2, kind: input, shape index: {}]   ;;  %s997_s3 = inlined_call_operand.vmem [shape: bf16[384,128], index: 3, kind: output, shape index: {}]  }
   0x1 LB: > { %s624_s13 = sadd.s32 4294967295, %s823_s12   ;;  %p628_p0 = scmp.ge.s32.totalorder %s823_s12, 1  ;;  %s823_s12 = sphi %s845_s12, %s13_s12  }
   0x2   : > { %p138_p1 = scmp.lt.s32.totalorder %s823_s12, 4 }
   0x4   : > { %p139_p2 = pnand %p628_p0, %p138_p1 }
   0x5   : > { %v775_v0 = vld [vmem:[%s995_s1] sm:$0xff] (!%p139_p2)   ;;  %s629_s16 = sshll.u32 (!%p139_p2), %s624_s13, 4  ;;  %v776_v1 = vld [vmem:[%s995_s1 + $0x8] sm:$0xff] (!%p139_p2)   ;;  %vm254_vm0 = vcmask (!%p139_p2), 261120  }
   0x6   : > { %142 = sbr.rel (%p139_p2) target bundleno = 425 (0x1a9), region = 32  ;;  %p163_p3 = scmp.lt.s32.totalorder (!%p139_p2), %s629_s16, 47  ;;  %743 = vmatprep.subr.bf16.mxu0 (!%p139_p2), %v775_v0  ;;  %763 = vmatprep.subr.bf16.mxu1 (!%p139_p2), %v775_v0  ;;  %v878_v10 = vld [vmem:[%s996_s2] ss:$0 sm:$0xff] (!%p139_p2) }
   0x7   : > { %744 = vmatpush3.bf16.msra.mxu0 (!%p139_p2), %v775_v0  ;;  %765 = vmatpush3.bf16.msra.mxu1 (!%p139_p2), %v775_v0 }
   0x8   : > { %745 = vmatprep.subr.bf16.mxu0 (!%p139_p2), %v776_v1  ;;  %764 = vmatprep.subr.bf16.mxu1 (!%p139_p2), %v776_v1 }
   0xb   : > { %746 = vmatpush3.bf16.msra.mxu0 (!%p139_p2), %v776_v1  ;;  %766 = vmatpush3.bf16.msra.mxu1 (!%p139_p2), %v776_v1 }
   0xd   : > { %s999_s16 = smov (!%p163_p3, %s629_s16), 47 }
   0xe   : > { %s630_s19 = sshll.u32 %s999_s16, 2 }
   0xf   : > { %s166_s22 = scalar_lea.vmem %s994_s0, %s630_s19  ;;  %s967_s27 = scalar_lea.vmem %s997_s3, %s630_s19 }
  0x10   : > { %v777_v2 = vld [vmem:[%s166_s22] sm:$0xff]   ;;  %v779_v4 = vld [vmem:[%s166_s22 + $0x8] sm:$0xff]   ;;  %v781_v6 = vld [vmem:[%s166_s22 + $0x10] sm:$0xff]  }
  0x11   : > { %v778_v3 = vld [vmem:[%s166_s22 + $0x20] sm:$0xff]   ;;  %747 = vmatprep.mubr.msk.bf16.mxu0 %vm254_vm0, %v777_v2  ;;  %v780_v5 = vld [vmem:[%s166_s22 + $0x28] sm:$0xff]   ;;  %v783_v7 = vld [vmem:[%s166_s22 + $0x30] sm:$0xff]  }
  0x12   : > { %755 = vmatprep.mubr.msk.bf16.mxu1 %vm254_vm0, %v778_v3  ;;  %748 = vmatmul.mubr.msk.bf16.vlgmr.msra.gmra.mrb[0].mxu0 %vm254_vm0, %v779_v4  ;;  %v782_v8 = vld [vmem:[%s166_s22 + $0x18] sm:$0xff]  }
  0x13   : > { %756 = vmatmul.mubr.msk.bf16.vlgmr.msra.gmra.mrb[0].mxu1 %vm254_vm0, %v780_v5  ;;  %751 = vmatprep.mubr.msk.bf16.mxu0 %vm254_vm0, %v781_v6  ;;  %v784_v9 = vld [vmem:[%s166_s22 + $0x38] sm:$0xff]  }
  0x14   : > { %759 = vmatprep.mubr.msk.bf16.mxu1 %vm254_vm0, %v783_v7 }
  0x1a   : > { %752 = vmatmul.mubr.msk.bf16.gmra.mrb[4].mxu0 %vm254_vm0, %v782_v8 }
  0x1b   : > { %760 = vmatmul.mubr.msk.bf16.gmra.mrb[4].mxu1 %vm254_vm0, %v784_v9 }
  0xe5   : > { %v749_v11 = vpop.f32.mrb[0].mxu0 }
  0xe6   : > { %v322_v12 = vadd.f32 %v749_v11, %v878_v10  ;;  %v757_v13 = vpop.f32.mrb[0].mxu1  ;;  %v313_v14 = vpop.f32.mrb[1].mxu0 }
  0xe7   : > { %v354_v15 = vadd.f32 %v757_v13, %v878_v10  ;;  %v314_v16 = vadd.f32 %v878_v10, %v313_v14  ;;  %v345_v17 = vpop.f32.mrb[1].mxu1  ;;  %v750_v18 = vpop.f32.mrb[2].mxu0 }
  0xe8   : > { %v883_v19 = vmax.f32 %v322_v12, 0.0  ;;  %v325_v20 = vadd.f32 %v750_v18, %v878_v10  ;;  %v758_v21 = vpop.f32.mrb[2].mxu1  ;;  %v316_v22 = vpop.f32.mrb[3].mxu0  ;;  %v346_v29 = vadd.f32 %v878_v10, %v345_v17 }
  0xe9   : > { %v886_v23 = vmax.f32 %v354_v15, 0.0  ;;  %v348_v24 = vpop.f32.mrb[3].mxu1  ;;  %v357_v26 = vadd.f32 %v758_v21, %v878_v10  ;;  %v893_v28 = vmax.f32 %v314_v16, 0.0  ;;  %v317_v38 = vadd.f32 %v878_v10, %v316_v22 }
  0xea   : > { %v888_v25 = vmax.f32 %v325_v20, 0.0  ;;  %v394_v27 = vmul.f32 %v883_v19, %v883_v19  ;;  %v349_v33 = vadd.f32 %v878_v10, %v348_v24  ;;  %v903_v37 = vmax.f32 %v346_v29, 0.0 }
  0xeb   : > { %v402_v30 = vmul.f32 %v886_v23, %v886_v23  ;;  %v898_v32 = vmax.f32 %v357_v26, 0.0  ;;  %v392_v39 = vmul.f32 %v893_v28, %v893_v28  ;;  %v913_v48 = vmax.f32 %v317_v38, 0.0 }
  0xec   : > { %412 = vadd.xlane.f32.xlu1 %v394_v27  ;;  %v395_v34 = vmul.f32 %v888_v25, %v888_v25  ;;  %v908_v45 = vmax.f32 %v349_v33, 0.0  ;;  %v400_v50 = vmul.f32 %v903_v37, %v903_v37 }
  0xed   : > { %428 = vadd.xlane.f32.xlu0 %v402_v30  ;;  %v753_v31 = vpop.f32.mrb[4].mxu0  ;;  %v403_v47 = vmul.f32 %v898_v32, %v898_v32  ;;  %v393_v56 = vmul.f32 %v913_v48, %v913_v48 }
  0xee   : > { %v329_v35 = vpop.f32.mrb[5].mxu0  ;;  %v761_v36 = vpop.f32.mrb[4].mxu1  ;;  %v338_v49 = vadd.f32 %v753_v31, %v878_v10  ;;  %v401_v53 = vmul.f32 %v908_v45, %v908_v45 }
  0xef   : > { %v754_v40 = vpop.f32.mrb[6].mxu0  ;;  %v361_v41 = vpop.f32.mrb[5].mxu1  ;;  %v330_v55 = vadd.f32 %v878_v10, %v329_v35  ;;  %v370_v2 = vadd.f32 %v761_v36, %v878_v10 }
  0xf0   : > { %414 = vadd.xlane.f32.xlu1 %v395_v34  ;;  %v332_v42 = vpop.f32.mrb[7].mxu0  ;;  %v762_v43 = vpop.f32.mrb[6].mxu1  ;;  %v341_v46 = vadd.f32 %v754_v40, %v878_v10  ;;  %v923_v54 = vmax.f32 %v338_v49, 0.0  ;;  %v362_v61 = vadd.f32 %v878_v10, %v361_v41 }
  0xf1   : > { %408 = vadd.xlane.f32.xlu0 %v392_v39  ;;  %v364_v44 = vpop.f32.mrb[7].mxu1  ;;  %v333_v52 = vadd.f32 %v878_v10, %v332_v42  ;;  %v933_v60 = vmax.f32 %v330_v55, 0.0  ;;  %v373_v63 = vadd.f32 %v762_v43, %v878_v10  ;;  %v952_v7 = vmax.f32 %v370_v2, 0.0 }
  0xf2   : > { %v918_v51 = vmax.f32 %v341_v46, 0.0  ;;  %v365_v58 = vadd.f32 %v878_v10, %v364_v44  ;;  %v398_v62 = vmul.f32 %v923_v54, %v923_v54  ;;  %v944_v3 = vmax.f32 %v362_v61, 0.0 }
  0xf3   : > { %v928_v57 = vmax.f32 %v333_v52, 0.0  ;;  %v396_v4 = vmul.f32 %v933_v60, %v933_v60  ;;  %v948_v5 = vmax.f32 %v373_v63, 0.0  ;;  %v406_v10 = vmul.f32 %v952_v7, %v952_v7 }
  0xf4   : > { %430 = vadd.xlane.f32.xlu1 %v403_v47  ;;  %v399_v59 = vmul.f32 %v918_v51, %v918_v51  ;;  %v939_v0 = vmax.f32 %v365_v58, 0.0  ;;  %v404_v8 = vmul.f32 %v944_v3, %v944_v3 }
  0xf5   : > { %424 = vadd.xlane.f32.xlu0 %v400_v50  ;;  %v397_v1 = vmul.f32 %v928_v57, %v928_v57  ;;  %v407_v9 = vmul.f32 %v948_v5, %v948_v5 }
  0xf6   : > { %v405_v6 = vmul.f32 %v939_v0, %v939_v0 }
  0xf8   : > { %426 = vadd.xlane.f32.xlu1 %v401_v53 }
  0xf9   : > { %410 = vadd.xlane.f32.xlu0 %v393_v56 }
  0xfc   : > { %422 = vadd.xlane.f32.xlu1 %v399_v59 }
  0xfd   : > { %420 = vadd.xlane.f32.xlu0 %v398_v62 }
 0x100   : > { %418 = vadd.xlane.f32.xlu1 %v397_v1 }
 0x101   : > { %416 = vadd.xlane.f32.xlu0 %v396_v4 }
 0x104   : > { %434 = vadd.xlane.f32.xlu1 %v405_v6 }
 0x105   : > { %432 = vadd.xlane.f32.xlu0 %v404_v8 }
 0x108   : > { %438 = vadd.xlane.f32.xlu1 %v407_v9 }
 0x109   : > { %436 = vadd.xlane.f32.xlu0 %v406_v10 }
 0x179   : > { %v413_v11 = vpop.xlane.xlu1 %412 }
 0x17a   : > { %v429_v12 = vpop.xlane.xlu0 %428  ;;  %v442_v13 = vadd.f32 1e-12, %v413_v11 }
 0x17b   : > { %v450_v15 = vadd.f32 1e-12, %v429_v12 }
 0x17c   : > { %785 = vrsqrt.f32 %v442_v13 }
 0x17d   : > { %v415_v14 = vpop.xlane.xlu1 %414 }
 0x17e   : > { %v443_v16 = vadd.f32 1e-12, %v415_v14  ;;  %v409_v17 = vpop.xlane.xlu0 %408 }
 0x17f   : > { %v440_v22 = vadd.f32 1e-12, %v409_v17 }
 0x180   : > { %787 = vrsqrt.f32 %v443_v16 }
 0x181   : > { %v431_v18 = vpop.xlane.xlu1 %430  ;;  %789 = vrsqrt.f32 %v450_v15 }
 0x182   : > { %v451_v20 = vadd.f32 1e-12, %v431_v18  ;;  %v425_v21 = vpop.xlane.xlu0 %424 }
 0x183   : > { %v448_v24 = vadd.f32 1e-12, %v425_v21 }
 0x184   : > { %791 = vrsqrt.f32 %v451_v20 }
 0x185   : > { %v427_v26 = vpop.xlane.xlu1 %426  ;;  %793 = vrsqrt.f32 %v448_v24 }
 0x186   : > { %v449_v27 = vadd.f32 1e-12, %v427_v26  ;;  %v411_v29 = vpop.xlane.xlu0 %410  ;;  %795 = vrsqrt.f32 %v440_v22  ;;  %v786_v31 = vpop.eup %785 }
 0x187   : > { %v441_v30 = vadd.f32 1e-12, %v411_v29  ;;  %v474_v38 = vmul.f32 %v786_v31, %v883_v19 }
 0x188   : > { %797 = vrsqrt.f32 %v449_v27 }
 0x189   : > { %799 = vrsqrt.f32 %v441_v30  ;;  %v423_v33 = vpop.xlane.xlu1 %422 }
 0x18a   : > { %v788_v34 = vpop.eup %787  ;;  %v447_v35 = vadd.f32 1e-12, %v423_v33  ;;  %v421_v36 = vpop.xlane.xlu0 %420 }
 0x18b   : > { %v475_v39 = vmul.f32 %v788_v34, %v888_v25  ;;  %v446_v40 = vadd.f32 1e-12, %v421_v36  ;;  %v790_v41 = vpop.eup %789 }
 0x18c   : > { %801 = vrsqrt.f32 %v447_v35  ;;  %v482_v19 = vmul.f32 %v790_v41, %v886_v23 }
 0x18d   : > { %v694_v42 = vpack.c.bf16 %v475_v39, %v474_v38  ;;  %803 = vrsqrt.f32 %v446_v40  ;;  %v419_v43 = vpop.xlane.xlu1 %418 }
 0x18e   : > { %v792_v44 = vpop.eup %791  ;;  %v445_v46 = vadd.f32 1e-12, %v419_v43  ;;  %v417_v47 = vpop.xlane.xlu0 %416 }
 0x18f   : > { %726 = vst [vmem:[%s967_s27 + $0x8] sm:$0xff] %v694_v42   ;;  %v483_v25 = vmul.f32 %v792_v44, %v898_v32  ;;  %v444_v49 = vadd.f32 1e-12, %v417_v47  ;;  %v794_v50 = vpop.eup %793 }
 0x190   : > { %805 = vrsqrt.f32 %v445_v46  ;;  %v796_v52 = vpop.eup %795  ;;  %v480_v62 = vmul.f32 %v794_v50, %v903_v37 }
 0x191   : > { %v714_v53 = vpack.c.bf16 %v483_v25, %v482_v19  ;;  %807 = vrsqrt.f32 %v444_v49  ;;  %v435_v55 = vpop.xlane.xlu1 %434  ;;  %v472_v32 = vmul.f32 %v796_v52, %v893_v28 }
 0x192   : > { %v798_v56 = vpop.eup %797  ;;  %v453_v58 = vadd.f32 1e-12, %v435_v55  ;;  %v433_v59 = vpop.xlane.xlu0 %432 }
 0x193   : > { %v800_v61 = vpop.eup %799  ;;  %730 = vst [vmem:[%s967_s27 + $0x28] sm:$0xff] %v714_v53   ;;  %v481_v23 = vmul.f32 %v798_v56, %v908_v45  ;;  %v452_v63 = vadd.f32 1e-12, %v433_v59 }
 0x194   : > { %v473_v1 = vmul.f32 %v800_v61, %v913_v48  ;;  %809 = vrsqrt.f32 %v453_v58 }
 0x195   : > { %v709_v2 = vpack.c.bf16 %v481_v23, %v480_v62  ;;  %811 = vrsqrt.f32 %v452_v63  ;;  %v439_v4 = vpop.xlane.xlu1 %438 }
 0x196   : > { %v802_v6 = vpop.eup %801  ;;  %v689_v8 = vpack.c.bf16 %v473_v1, %v472_v32  ;;  %v455_v9 = vadd.f32 1e-12, %v439_v4  ;;  %v437_v10 = vpop.xlane.xlu0 %436 }
 0x197   : > { %v804_v11 = vpop.eup %803  ;;  %729 = vst [vmem:[%s967_s27 + $0x20] sm:$0xff] %v709_v2   ;;  %v479_v37 = vmul.f32 %v802_v6, %v918_v51  ;;  %v454_v45 = vadd.f32 1e-12, %v437_v10 }
 0x198   : > { %690 = vst [vmem:[%s967_s27] sm:$0xff] %v689_v8   ;;  %v478_v28 = vmul.f32 %v804_v11, %v923_v54  ;;  %813 = vrsqrt.f32 %v455_v9 }
 0x199   : > { %815 = vrsqrt.f32 %v454_v45 }
 0x19a   : > { %v806_v48 = vpop.eup %805  ;;  %v704_v12 = vpack.c.bf16 %v479_v37, %v478_v28 }
 0x19b   : > { %v808_v13 = vpop.eup %807  ;;  %v477_v14 = vmul.f32 %v806_v48, %v928_v57 }
 0x19c   : > { %728 = vst [vmem:[%s967_s27 + $0x18] sm:$0xff] %v704_v12   ;;  %v476_v15 = vmul.f32 %v808_v13, %v933_v60 }
 0x19e   : > { %v810_v16 = vpop.eup %809  ;;  %v699_v17 = vpack.c.bf16 %v477_v14, %v476_v15 }
 0x19f   : > { %v812_v51 = vpop.eup %811  ;;  %v485_v18 = vmul.f32 %v810_v16, %v939_v0 }
 0x1a0   : > { %727 = vst [vmem:[%s967_s27 + $0x10] sm:$0xff] %v699_v17   ;;  %v484_v54 = vmul.f32 %v812_v51, %v944_v3 }
 0x1a2   : > { %v814_v20 = vpop.eup %813  ;;  %v719_v21 = vpack.c.bf16 %v485_v18, %v484_v54 }
 0x1a3   : > { %v816_v22 = vpop.eup %815  ;;  %v487_v24 = vmul.f32 %v814_v20, %v948_v5 }
 0x1a4   : > { %731 = vst [vmem:[%s967_s27 + $0x30] sm:$0xff] %v719_v21   ;;  %v486_v57 = vmul.f32 %v816_v22, %v952_v7 }
 0x1a6   : > { %v724_v26 = vpack.c.bf16 %v487_v24, %v486_v57 }
 0x1a8   : > { %732 = vst [vmem:[%s967_s27 + $0x38] sm:$0xff] %v724_v26  }
 0x1a9 PF: > { %s13_s12 = sadd.s32 1, %s823_s12  }
 0x1aa   : > { %p10_p4 = scmp.ge.s32.totalorder %s13_s12, 5  }
 0x1ac   :  { %12 = sbr.rel (!%p10_p4) target bundleno = 1 (0x1), region = 62 }

// kernel: meta_baseline_dense_forward.3
= control target key start
LH: loop header
LB: loop body
LE: loop exit
PB: predicated region body
PF: predicated region fallthrough
CT: control target
= control target key end

     0   :  { %s1951_s9 = smov 0   ;;  %s1953_s10 = smov 0   ;;  %s3275_s0 = inlined_call_operand.vmem [shape: bf16[2,256,128], index: 0, kind: input, shape index: {}]   ;;  %s3276_s1 = inlined_call_operand.vmem [shape: bf16[2,3,128,128], index: 1, kind: input, shape index: {}]   ;;  %s3277_s2 = inlined_call_operand.vmem [shape: f32[2,16,3], index: 2, kind: output, shape index: {}]  }
   0x1   :  { %s1955_s11 = smov 0   ;;  %s1957_s12 = smov 0  }
   0x2   :  { %s1959_s13 = smov 0  }
   0x3 LB: > { %s24_s14 = sadd.s32 1, %s1923_s11  ;;  %s31_s15 = sadd.s32 1, %s1927_s12  ;;  %s1931_s13 = sphi %s1959_s13, %s12_s13   ;;  %s1927_s12 = sphi %s1957_s12, %s3531_s12   ;;  %s1923_s11 = sphi %s1955_s11, %s3530_s11   ;;  %s1919_s10 = sphi %s1953_s10, %s3529_s10   ;;  %s1915_s9 = sphi %s1951_s9, %s3528_s9  }
   0x4   : > { %p25_p0 = scmp.ge.s32.totalorder %s24_s14, 3  ;;  %p1700_p1 = scmp.ge.s32.totalorder %s1931_s13, 1 }
   0x5   : > { %p156_p2 = scmp.lt.s32.totalorder %s1931_s13, 7 }
   0x6   : > { %s3533_s14 = smov (%p25_p0, %s24_s14), 0  ;;  %s3535_s15 = smov (!%p25_p0, %s31_s15), %s1927_s12 }
   0x7   : > { %p157_p3 = pnand %p1700_p1, %p156_p2  ;;  %p33_p4 = scmp.ge.s32.totalorder %s3535_s15, 2 }
   0x9   : > { %s3537_s15 = smov (%p33_p4, %s3535_s15), 0  ;;  %160 = sbr.rel (%p157_p3) target bundleno = 1256 (0x4e8), region = 28 }
  0x10   : > { %p196_p5 = scmp.lt.s32.totalorder %s1919_s10, 1  ;;  %p207_p6 = scmp.lt.s32.totalorder %s1915_s9, 2 }
  0x11   : > { %p1707_p7 = scmp.ne.s32.totalorder %s1915_s9, 0 }
  0x12   : > { %s3539_s10 = smov (!%p196_p5, %s1919_s10), 1  ;;  %vm229_vm0 = vcmask (!%p1707_p7), 23552   ;;  %v1933_v0 = vmov (!%p1707_p7), 0.0  }
  0x13   : > { %s208_s16 = scalar_select %p207_p6, %s1915_s9, 2 }
  0x14   : > { %s1735_s17 = sshll.u32 %s3539_s10, 7  ;;  %s1825_s18 = smul.u32 48, %s3539_s10  ;;  %230 = vst.msk [vmem:[#allocation2] sm:$0xff] (!%p1707_p7), %vm229_vm0, %v1933_v0  ;;  %231 = vst.msk [vmem:[#allocation2 + $0x8] sm:$0xff] (!%p1707_p7), %vm229_vm0, %v1933_v0 }
  0x15   : > { %s1988_s21 = scalar_lea.vmem %s3275_s0, %s1735_s17  ;;  %s1703_s22 = sshll.u32 %s208_s16, 4 }
  0x16   : > { %s211_s23 = sadd.s32 %s1825_s18, %s1703_s22  ;;  %s1736_s24 = sshll.u32 %s3539_s10, 4 }
  0x17   : > { %s1704_s25 = sshll.u32 %s211_s23, 2  ;;  %s1993_s28 = scalar_lea.vmem %s3277_s2, %s1736_s24 }
  0x18   : > { %s1998_s3 = scalar_lea.vmem %s3276_s1, %s1704_s25  ;;  %228 = sbr.rel (%p1707_p7) target bundleno = 31 (0x1f), region = 32 }
  0x1f PF: > { %v1869_v1 = vld [vmem:[%s1998_s3] sm:$0xff]   ;;  %v1870_v2 = vld [vmem:[%s1998_s3 + $0x8] sm:$0xff]   ;;  %v1871_v3 = vld [vmem:[%s1998_s3 + $0x10] sm:$0xff]   ;;  %v3278_v25 = vlaneseq  ;;  %v1934_v27 = vmov -1e+30  }
  0x20   : > { %1761 = vmatprep.subr.bf16.mxu0 %v1869_v1  ;;  %1809 = vmatprep.subr.bf16.mxu1 %v1869_v1  ;;  %v1877_v4 = vld [vmem:[%s1988_s21] sm:$0xff]   ;;  %v1872_v6 = vld [vmem:[%s1998_s3 + $0x18] sm:$0xff]   ;;  %v1874_v8 = vld [vmem:[%s1998_s3 + $0x28] sm:$0xff]  }
  0x21   : > { %1762 = vmatpush3.bf16.xpose.msra.mxu0 %v1869_v1  ;;  %1817 = vmatpush3.bf16.xpose.msra.mxu1 %v1869_v1  ;;  %v1878_v5 = vld [vmem:[%s1988_s21 + $0x40] sm:$0xff]   ;;  %v1875_v9 = vld [vmem:[%s1998_s3 + $0x30] sm:$0xff]   ;;  %v1876_v10 = vld [vmem:[%s1998_s3 + $0x38] sm:$0xff]   ;;  %v2026_v26 = vand.u32 127, %v3278_v25 }
  0x22   : > { %1763 = vmatprep.subr.bf16.mxu0 %v1870_v2  ;;  %1810 = vmatprep.subr.bf16.mxu1 %v1870_v2  ;;  %v1873_v7 = vld [vmem:[%s1998_s3 + $0x20] sm:$0xff]   ;;  %v1879_v11 = vld [vmem:[%s1988_s21 + $0x8] sm:$0xff]   ;;  %v1881_v13 = vld [vmem:[%s1988_s21 + $0x10] sm:$0xff]  }
  0x23   : > { %1777 = vmatprep.mubr.bf16.mxu0 %v1877_v4  ;;  %1793 = vmatprep.mubr.bf16.mxu1 %v1878_v5  ;;  %v1880_v12 = vld [vmem:[%s1988_s21 + $0x48] sm:$0xff]   ;;  %v1883_v14 = vld [vmem:[%s1988_s21 + $0x50] sm:$0xff]   ;;  %v1882_v15 = vld [vmem:[%s1988_s21 + $0x18] sm:$0xff]   ;;  %3379 = vst [vmem:[#allocation3_spill] sm:$0xff] %v2026_v26  ;;  %vm282_vm1 = vcmp.lt.s32.totalorder %v2026_v26, 32 }
  0x24   : > { %v1884_v16 = vld [vmem:[%s1988_s21 + $0x58] sm:$0xff]   ;;  %v1885_v17 = vld [vmem:[%s1988_s21 + $0x20] sm:$0xff]   ;;  %v1886_v19 = vld [vmem:[%s1988_s21 + $0x28] sm:$0xff]   ;;  %v2029_v28 = vsel %vm282_vm1, 0.0, %v1934_v27 }
  0x25   : > { %v1887_v18 = vld [vmem:[%s1988_s21 + $0x60] sm:$0xff]   ;;  %v1888_v20 = vld [vmem:[%s1988_s21 + $0x68] sm:$0xff]   ;;  %v1889_v21 = vld [vmem:[%s1988_s21 + $0x30] sm:$0xff]  }
  0x26   : > { %v1891_v22 = vld [vmem:[%s1988_s21 + $0x70] sm:$0xff]   ;;  %v1890_v23 = vld [vmem:[%s1988_s21 + $0x38] sm:$0xff]  }
  0x27   : > { %v1892_v24 = vld [vmem:[%s1988_s21 + $0x78] sm:$0xff]  }
  0x29   : > { %1764 = vmatpush3.bf16.xpose.msra.mxu0 %v1870_v2  ;;  %1818 = vmatpush3.bf16.xpose.msra.mxu1 %v1870_v2 }
  0x2a   : > { %1765 = vmatprep.subr.bf16.mxu0 %v1871_v3  ;;  %1811 = vmatprep.subr.bf16.mxu1 %v1871_v3 }
  0x31   : > { %1766 = vmatpush3.bf16.xpose.msra.mxu0 %v1871_v3  ;;  %1819 = vmatpush3.bf16.xpose.msra.mxu1 %v1871_v3 }
  0x32   : > { %1767 = vmatprep.subr.bf16.mxu0 %v1872_v6  ;;  %1812 = vmatprep.subr.bf16.mxu1 %v1872_v6 }
  0x39   : > { %1768 = vmatpush3.bf16.xpose.msra.mxu0 %v1872_v6  ;;  %1820 = vmatpush3.bf16.xpose.msra.mxu1 %v1872_v6 }
  0x3a   : > { %1769 = vmatprep.subr.bf16.mxu0 %v1873_v7  ;;  %1813 = vmatprep.subr.bf16.mxu1 %v1873_v7 }
  0x41   : > { %1770 = vmatpush3.bf16.xpose.msra.mxu0 %v1873_v7  ;;  %1821 = vmatpush3.bf16.xpose.msra.mxu1 %v1873_v7 }
  0x42   : > { %1771 = vmatprep.subr.bf16.mxu0 %v1874_v8  ;;  %1814 = vmatprep.subr.bf16.mxu1 %v1874_v8 }
  0x49   : > { %1772 = vmatpush3.bf16.xpose.msra.mxu0 %v1874_v8  ;;  %1822 = vmatpush3.bf16.xpose.msra.mxu1 %v1874_v8 }
  0x4a   : > { %1773 = vmatprep.subr.bf16.mxu0 %v1875_v9  ;;  %1815 = vmatprep.subr.bf16.mxu1 %v1875_v9 }
  0x51   : > { %1774 = vmatpush3.bf16.xpose.msra.mxu0 %v1875_v9  ;;  %1823 = vmatpush3.bf16.xpose.msra.mxu1 %v1875_v9 }
  0x52   : > { %1775 = vmatprep.subr.bf16.mxu0 %v1876_v10  ;;  %1816 = vmatprep.subr.bf16.mxu1 %v1876_v10 }
  0x59   : > { %1776 = vmatpush3.bf16.xpose.msra.mxu0 %v1876_v10  ;;  %1824 = vmatpush3.bf16.xpose.msra.mxu1 %v1876_v10 }
  0x60   : > { %1778 = vmatmul.mubr.bf16.vlgmr.msra.gmra.mrb[0].mxu0 %v1879_v11  ;;  %1794 = vmatmul.mubr.bf16.vlgmr.msra.gmra.mrb[0].mxu1 %v1880_v12 }
  0x61   : > { %1781 = vmatprep.mubr.bf16.mxu0 %v1881_v13  ;;  %1797 = vmatprep.mubr.bf16.mxu1 %v1883_v14 }
  0x68   : > { %1782 = vmatmul.mubr.bf16.gmra.mrb[4].mxu0 %v1882_v15  ;;  %1798 = vmatmul.mubr.bf16.gmra.mrb[4].mxu1 %v1884_v16 }
  0x69   : > { %1785 = vmatprep.mubr.bf16.mxu0 %v1885_v17  ;;  %1801 = vmatprep.mubr.bf16.mxu1 %v1887_v18 }
  0x70   : > { %1786 = vmatmul.mubr.bf16.gmra.mrb[8].mxu0 %v1886_v19  ;;  %1802 = vmatmul.mubr.bf16.gmra.mrb[8].mxu1 %v1888_v20 }
  0x71   : > { %1789 = vmatprep.mubr.bf16.mxu0 %v1889_v21  ;;  %1805 = vmatprep.mubr.bf16.mxu1 %v1891_v22 }
  0x78   : > { %1790 = vmatmul.mubr.bf16.gmra.mrb[12].mxu0 %v1890_v23  ;;  %1806 = vmatmul.mubr.bf16.gmra.mrb[12].mxu1 %v1892_v24 }
 0x133   : > { %v1779_v29 = vpop.f32.mrb[0].mxu0  ;;  %v1795_v30 = vpop.f32.mrb[0].mxu1 }
 0x134   : > { %v2032_v31 = vadd.f32 %v1779_v29, %v2029_v28  ;;  %v2035_v32 = vadd.f32 %v1795_v30, %v2029_v28  ;;  %v462_v33 = vpop.f32.mrb[1].mxu0  ;;  %v526_v34 = vpop.f32.mrb[1].mxu1 }
 0x135   : > { %v1780_v35 = vpop.f32.mrb[2].mxu0  ;;  %v1796_v36 = vpop.f32.mrb[2].mxu1  ;;  %v2040_v39 = vadd.f32 %v462_v33, %v2029_v28  ;;  %v2048_v43 = vadd.f32 %v526_v34, %v2029_v28 }
 0x136   : > { %625 = vmax.xlane.f32.xlu0 %v2035_v32  ;;  %v529_v37 = vpop.f32.mrb[3].mxu1  ;;  %593 = vmax.xlane.f32.xlu1 %v2032_v31  ;;  %v465_v38 = vpop.f32.mrb[3].mxu0  ;;  %v2043_v40 = vadd.f32 %v1780_v35, %v2029_v28  ;;  %v2051_v44 = vadd.f32 %v1796_v36, %v2029_v28 }
 0x137   : > { %v2056_v51 = vadd.f32 %v529_v37, %v2029_v28  ;;  %v2059_v52 = vadd.f32 %v465_v38, %v2029_v28 }
 0x13a   : > { %595 = vmax.xlane.f32.xlu1 %v2043_v40  ;;  %589 = vmax.xlane.f32.xlu0 %v2040_v39 }
 0x13b   : > { %v1783_v41 = vpop.f32.mrb[4].mxu0  ;;  %v1799_v42 = vpop.f32.mrb[4].mxu1 }
 0x13c   : > { %v478_v45 = vpop.f32.mrb[5].mxu0  ;;  %v542_v46 = vpop.f32.mrb[5].mxu1  ;;  %v2062_v53 = vadd.f32 %v1783_v41, %v2029_v28  ;;  %v2070_v61 = vadd.f32 %v1799_v42, %v2029_v28 }
 0x13d   : > { %v1784_v47 = vpop.f32.mrb[6].mxu0  ;;  %v1800_v48 = vpop.f32.mrb[6].mxu1  ;;  %v2080_v3 = vadd.f32 %v478_v45, %v2029_v28  ;;  %v2088_v11 = vadd.f32 %v542_v46, %v2029_v28 }
 0x13e   : > { %627 = vmax.xlane.f32.xlu1 %v2051_v44  ;;  %621 = vmax.xlane.f32.xlu0 %v2048_v43  ;;  %v481_v49 = vpop.f32.mrb[7].mxu0  ;;  %v545_v50 = vpop.f32.mrb[7].mxu1  ;;  %v2067_v54 = vadd.f32 %v1784_v47, %v2029_v28  ;;  %v2075_v62 = vadd.f32 %v1800_v48, %v2029_v28 }
 0x13f   : > { %v2083_v4 = vadd.f32 %v481_v49, %v2029_v28  ;;  %v2091_v12 = vadd.f32 %v545_v50, %v2029_v28 }
 0x142   : > { %623 = vmax.xlane.f32.xlu1 %v2056_v51  ;;  %591 = vmax.xlane.f32.xlu0 %v2059_v52 }
 0x143   : > { %v1787_v55 = vpop.f32.mrb[8].mxu0  ;;  %v1803_v56 = vpop.f32.mrb[8].mxu1 }
 0x144   : > { %v494_v57 = vpop.f32.mrb[9].mxu0  ;;  %v558_v58 = vpop.f32.mrb[9].mxu1  ;;  %v2094_v13 = vadd.f32 %v1787_v55, %v2029_v28  ;;  %v2102_v15 = vadd.f32 %v1803_v56, %v2029_v28 }
 0x145   : > { %v1788_v59 = vpop.f32.mrb[10].mxu0  ;;  %v1804_v60 = vpop.f32.mrb[10].mxu1  ;;  %v2112_v17 = vadd.f32 %v494_v57, %v2029_v28  ;;  %v2120_v19 = vadd.f32 %v558_v58, %v2029_v28 }
 0x146   : > { %603 = vmax.xlane.f32.xlu1 %v2067_v54  ;;  %601 = vmax.xlane.f32.xlu0 %v2062_v53  ;;  %v497_v63 = vpop.f32.mrb[11].mxu0  ;;  %v561_v0 = vpop.f32.mrb[11].mxu1  ;;  %v2099_v14 = vadd.f32 %v1788_v59, %v2029_v28  ;;  %v2107_v16 = vadd.f32 %v1804_v60, %v2029_v28 }
 0x147   : > { %v2115_v18 = vadd.f32 %v497_v63, %v2029_v28  ;;  %v2123_v20 = vadd.f32 %v561_v0, %v2029_v28 }
 0x14a   : > { %635 = vmax.xlane.f32.xlu1 %v2075_v62  ;;  %633 = vmax.xlane.f32.xlu0 %v2070_v61 }
 0x14b   : > { %v1791_v1 = vpop.f32.mrb[12].mxu0  ;;  %v1807_v2 = vpop.f32.mrb[12].mxu1 }
 0x14c   : > { %v510_v5 = vpop.f32.mrb[13].mxu0  ;;  %v574_v6 = vpop.f32.mrb[13].mxu1  ;;  %v2126_v21 = vadd.f32 %v1791_v1, %v2029_v28  ;;  %v2152_v30 = vadd.f32 %v1807_v2, %v2029_v28 }
 0x14d   : > { %v1792_v7 = vpop.f32.mrb[14].mxu0  ;;  %v1808_v8 = vpop.f32.mrb[14].mxu1  ;;  %v2136_v23 = vadd.f32 %v510_v5, %v2029_v28  ;;  %v2142_v27 = vadd.f32 %v574_v6, %v2029_v28 }
 0x14e   : > { %599 = vmax.xlane.f32.xlu1 %v2083_v4  ;;  %597 = vmax.xlane.f32.xlu0 %v2080_v3  ;;  %v513_v9 = vpop.f32.mrb[15].mxu0  ;;  %v577_v10 = vpop.f32.mrb[15].mxu1  ;;  %v2131_v22 = vadd.f32 %v1792_v7, %v2029_v28  ;;  %v2155_v33 = vadd.f32 %v1808_v8, %v2029_v28 }
 0x14f   : > { %v2139_v24 = vadd.f32 %v513_v9, %v2029_v28  ;;  %v2147_v29 = vadd.f32 %v577_v10, %v2029_v28 }
 0x152   : > { %631 = vmax.xlane.f32.xlu1 %v2091_v12  ;;  %629 = vmax.xlane.f32.xlu0 %v2088_v11 }
 0x156   : > { %611 = vmax.xlane.f32.xlu1 %v2099_v14  ;;  %609 = vmax.xlane.f32.xlu0 %v2094_v13 }
 0x15a   : > { %643 = vmax.xlane.f32.xlu1 %v2107_v16  ;;  %641 = vmax.xlane.f32.xlu0 %v2102_v15 }
 0x15e   : > { %607 = vmax.xlane.f32.xlu1 %v2115_v18  ;;  %605 = vmax.xlane.f32.xlu0 %v2112_v17 }
 0x162   : > { %639 = vmax.xlane.f32.xlu1 %v2123_v20  ;;  %637 = vmax.xlane.f32.xlu0 %v2120_v19 }
 0x166   : > { %619 = vmax.xlane.f32.xlu1 %v2131_v22  ;;  %617 = vmax.xlane.f32.xlu0 %v2126_v21 }
 0x16a   : > { %615 = vmax.xlane.f32.xlu1 %v2139_v24  ;;  %613 = vmax.xlane.f32.xlu0 %v2136_v23 }
 0x16e   : > { %647 = vmax.xlane.f32.xlu1 %v2147_v29  ;;  %645 = vmax.xlane.f32.xlu0 %v2142_v27 }
 0x172   : > { %651 = vmax.xlane.f32.xlu1 %v2155_v33  ;;  %649 = vmax.xlane.f32.xlu0 %v2152_v30 }
 0x1c3   : > { %v2159_v34 = vpop.xlane.xlu0 %625  ;;  %v2161_v35 = vpop.xlane.xlu1 %593 }
 0x1c4   : > { %vm687_vm2 = vcmp.ge.f32.partialorder %v2032_v31, %v2161_v35  ;;  %vm703_vm3 = vcmp.ge.f32.partialorder %v2035_v32, %v2159_v34 }
 0x1c5   : > { %v2166_v36 = vsel %vm687_vm2, -inf, %v2032_v31  ;;  %v2181_v41 = vsel %vm703_vm3, -inf, %v2035_v32 }
 0x1c6   : > { %753 = vmax.xlane.f32.xlu0 %v2166_v36 }
 0x1c7   : > { %v2171_v28 = vpop.xlane.xlu1 %595  ;;  %v2173_v37 = vpop.xlane.xlu0 %589 }
 0x1c8   : > { %vm688_vm4 = vcmp.ge.f32.partialorder %v2043_v40, %v2171_v28  ;;  %vm685_vm5 = vcmp.ge.f32.partialorder %v2040_v39, %v2173_v37 }
 0x1c9   : > { %v2178_v38 = vsel %vm688_vm4, -inf, %v2043_v40  ;;  %v2197_v32 = vsel %vm685_vm5, -inf, %v2040_v39 }
 0x1ca   : > { %755 = vmax.xlane.f32.xlu1 %v2178_v38  ;;  %785 = vmax.xlane.f32.xlu0 %v2181_v41 }
 0x1cb   : > { %v2187_v31 = vpop.xlane.xlu1 %627  ;;  %v2189_v42 = vpop.xlane.xlu0 %621 }
 0x1cc   : > { %vm704_vm6 = vcmp.ge.f32.partialorder %v2051_v44, %v2187_v31  ;;  %vm701_vm7 = vcmp.ge.f32.partialorder %v2048_v43, %v2189_v42 }
 0x1cd   : > { %v2194_v40 = vsel %vm704_vm6, -inf, %v2051_v44  ;;  %v2210_v44 = vsel %vm701_vm7, -inf, %v2048_v43 }
 0x1ce   : > { %787 = vmax.xlane.f32.xlu1 %v2194_v40  ;;  %749 = vmax.xlane.f32.xlu0 %v2197_v32 }
 0x1cf   : > { %v2203_v45 = vpop.xlane.xlu1 %623  ;;  %v2205_v46 = vpop.xlane.xlu0 %591 }
 0x1d0   : > { %vm686_vm8 = vcmp.ge.f32.partialorder %v2059_v52, %v2205_v46  ;;  %vm702_vm9 = vcmp.ge.f32.partialorder %v2056_v51, %v2203_v45 }
 0x1d1   : > { %v2213_v39 = vsel %vm686_vm8, -inf, %v2059_v52  ;;  %v2226_v43 = vsel %vm702_vm9, -inf, %v2056_v51 }
 0x1d2   : > { %781 = vmax.xlane.f32.xlu0 %v2210_v44  ;;  %751 = vmax.xlane.f32.xlu1 %v2213_v39 }
 0x1d3   : > { %v2219_v47 = vpop.xlane.xlu1 %603  ;;  %v2221_v48 = vpop.xlane.xlu0 %601 }
 0x1d4   : > { %vm691_vm10 = vcmp.ge.f32.partialorder %v2062_v53, %v2221_v48  ;;  %vm692_vm11 = vcmp.ge.f32.partialorder %v2067_v54, %v2219_v47 }
 0x1d5   : > { %v2229_v49 = vsel %vm691_vm10, -inf, %v2062_v53  ;;  %v2242_v51 = vsel %vm692_vm11, -inf, %v2067_v54 }
 0x1d6   : > { %783 = vmax.xlane.f32.xlu1 %v2226_v43  ;;  %761 = vmax.xlane.f32.xlu0 %v2229_v49 }
 0x1d7   : > { %v2235_v50 = vpop.xlane.xlu1 %635  ;;  %v2237_v52 = vpop.xlane.xlu0 %633 }
 0x1d8   : > { %3380 = vst [vmem:[#allocation4_spill] sm:$0xff] %v2235_v50  ;;  %3381 = vst [vmem:[#allocation5_spill] sm:$0xff] %v2237_v52  ;;  %vm707_vm12 = vcmp.ge.f32.partialorder %v2070_v61, %v2237_v52  ;;  %vm708_vm13 = vcmp.ge.f32.partialorder %v2075_v62, %v2235_v50 }
 0x1d9   : > { %v2245_v53 = vsel %vm707_vm12, -inf, %v2070_v61  ;;  %v2258_v54 = vsel %vm708_vm13, -inf, %v2075_v62 }
 0x1da   : > { %763 = vmax.xlane.f32.xlu1 %v2242_v51  ;;  %793 = vmax.xlane.f32.xlu0 %v2245_v53 }
 0x1db   : > { %v2251_v55 = vpop.xlane.xlu1 %599  ;;  %v2253_v56 = vpop.xlane.xlu0 %597 }
 0x1dc   : > { %3382 = vst [vmem:[#allocation6_spill] sm:$0xff] %v2251_v55  ;;  %3383 = vst [vmem:[#allocation7_spill] sm:$0xff] %v2253_v56  ;;  %vm689_vm14 = vcmp.ge.f32.partialorder %v2080_v3, %v2253_v56  ;;  %vm690_vm15 = vcmp.ge.f32.partialorder %v2083_v4, %v2251_v55 }
 0x1dd   : > { %v2261_v57 = vsel %vm689_vm14, -inf, %v2080_v3  ;;  %v2274_v60 = vsel %vm690_vm15, -inf, %v2083_v4 }
 0x1de   : > { %795 = vmax.xlane.f32.xlu1 %v2258_v54  ;;  %757 = vmax.xlane.f32.xlu0 %v2261_v57 }
 0x1df   : > { %v2267_v58 = vpop.xlane.xlu1 %631  ;;  %v2269_v59 = vpop.xlane.xlu0 %629 }
 0x1e0   : > { %3384 = vst [vmem:[#allocation8_spill] sm:$0xff] %v2267_v58  ;;  %3385 = vst [vmem:[#allocation9_spill] sm:$0xff] %v2269_v59  ;;  %vm705_vm0 = vcmp.ge.f32.partialorder %v2088_v11, %v2269_v59  ;;  %vm706_vm1 = vcmp.ge.f32.partialorder %v2091_v12, %v2267_v58 }
 0x1e1   : > { %v2277_v61 = vsel %vm705_vm0, -inf, %v2088_v11  ;;  %v2290_v0 = vsel %vm706_vm1, -inf, %v2091_v12 }
 0x1e2   : > { %759 = vmax.xlane.f32.xlu1 %v2274_v60  ;;  %789 = vmax.xlane.f32.xlu0 %v2277_v61 }
 0x1e3   : > { %v2283_v62 = vpop.xlane.xlu1 %611  ;;  %v2285_v63 = vpop.xlane.xlu0 %609 }
 0x1e4   : > { %3386 = vst [vmem:[#allocation10_spill] sm:$0xff] %v2283_v62  ;;  %3387 = vst [vmem:[#allocation11_spill] sm:$0xff] %v2285_v63  ;;  %vm695_vm2 = vcmp.ge.f32.partialorder %v2094_v13, %v2285_v63  ;;  %vm696_vm3 = vcmp.ge.f32.partialorder %v2099_v14, %v2283_v62 }
 0x1e5   : > { %v2293_v1 = vsel %vm695_vm2, -inf, %v2094_v13  ;;  %v2306_v4 = vsel %vm696_vm3, -inf, %v2099_v14 }
 0x1e6   : > { %791 = vmax.xlane.f32.xlu1 %v2290_v0  ;;  %769 = vmax.xlane.f32.xlu0 %v2293_v1 }
 0x1e7   : > { %v2299_v2 = vpop.xlane.xlu1 %643  ;;  %v2301_v3 = vpop.xlane.xlu0 %641 }
 0x1e8   : > { %3388 = vst [vmem:[#allocation12_spill] sm:$0xff] %v2299_v2  ;;  %3389 = vst [vmem:[#allocation13_spill] sm:$0xff] %v2301_v3  ;;  %vm711_vm4 = vcmp.ge.f32.partialorder %v2102_v15, %v2301_v3  ;;  %vm712_vm5 = vcmp.ge.f32.partialorder %v2107_v16, %v2299_v2 }
 0x1e9   : > { %v2309_v5 = vsel %vm711_vm4, -inf, %v2102_v15  ;;  %v2322_v8 = vsel %vm712_vm5, -inf, %v2107_v16 }
 0x1ea   : > { %771 = vmax.xlane.f32.xlu1 %v2306_v4  ;;  %801 = vmax.xlane.f32.xlu0 %v2309_v5 }
 0x1eb   : > { %v2315_v6 = vpop.xlane.xlu1 %607  ;;  %v2317_v7 = vpop.xlane.xlu0 %605 }
 0x1ec   : > { %3390 = vst [vmem:[#allocation14_spill] sm:$0xff] %v2315_v6  ;;  %3391 = vst [vmem:[#allocation15_spill] sm:$0xff] %v2317_v7  ;;  %vm693_vm6 = vcmp.ge.f32.partialorder %v2112_v17, %v2317_v7  ;;  %vm694_vm7 = vcmp.ge.f32.partialorder %v2115_v18, %v2315_v6 }
 0x1ed   : > { %v2325_v9 = vsel %vm693_vm6, -inf, %v2112_v17  ;;  %v2338_v12 = vsel %vm694_vm7, -inf, %v2115_v18 }
 0x1ee   : > { %803 = vmax.xlane.f32.xlu1 %v2322_v8  ;;  %765 = vmax.xlane.f32.xlu0 %v2325_v9 }
 0x1ef   : > { %v2331_v10 = vpop.xlane.xlu1 %639  ;;  %v2333_v11 = vpop.xlane.xlu0 %637 }
 0x1f0   : > { %3392 = vst [vmem:[#allocation16_spill] sm:$0xff] %v2331_v10  ;;  %3393 = vst [vmem:[#allocation17_spill] sm:$0xff] %v2333_v11  ;;  %vm709_vm8 = vcmp.ge.f32.partialorder %v2120_v19, %v2333_v11  ;;  %vm710_vm9 = vcmp.ge.f32.partialorder %v2123_v20, %v2331_v10 }
 0x1f1   : > { %v2341_v13 = vsel %vm709_vm8, -inf, %v2120_v19  ;;  %v2354_v16 = vsel %vm710_vm9, -inf, %v2123_v20 }
 0x1f2   : > { %767 = vmax.xlane.f32.xlu1 %v2338_v12  ;;  %797 = vmax.xlane.f32.xlu0 %v2341_v13 }
 0x1f3   : > { %v2347_v14 = vpop.xlane.xlu1 %619  ;;  %v2349_v15 = vpop.xlane.xlu0 %617 }
 0x1f4   : > { %3394 = vst [vmem:[#allocation18_spill] sm:$0xff] %v2347_v14  ;;  %3395 = vst [vmem:[#allocation19_spill] sm:$0xff] %v2349_v15  ;;  %vm699_vm10 = vcmp.ge.f32.partialorder %v2126_v21, %v2349_v15  ;;  %vm700_vm11 = vcmp.ge.f32.partialorder %v2131_v22, %v2347_v14 }
 0x1f5   : > { %v2357_v17 = vsel %vm699_vm10, -inf, %v2126_v21  ;;  %v2370_v20 = vsel %vm700_vm11, -inf, %v2131_v22 }
 0x1f6   : > { %799 = vmax.xlane.f32.xlu1 %v2354_v16  ;;  %777 = vmax.xlane.f32.xlu0 %v2357_v17 }
 0x1f7   : > { %v2363_v18 = vpop.xlane.xlu1 %615  ;;  %v2365_v19 = vpop.xlane.xlu0 %613 }
 0x1f8   : > { %3396 = vst [vmem:[#allocation20_spill] sm:$0xff] %v2363_v18  ;;  %3397 = vst [vmem:[#allocation21_spill] sm:$0xff] %v2365_v19  ;;  %vm697_vm12 = vcmp.ge.f32.partialorder %v2136_v23, %v2365_v19  ;;  %vm698_vm13 = vcmp.ge.f32.partialorder %v2139_v24, %v2363_v18 }
 0x1f9   : > { %v2373_v21 = vsel %vm697_vm12, -inf, %v2136_v23  ;;  %v2386_v22 = vsel %vm698_vm13, -inf, %v2139_v24 }
 0x1fa   : > { %779 = vmax.xlane.f32.xlu1 %v2370_v20  ;;  %773 = vmax.xlane.f32.xlu0 %v2373_v21 }
 0x1fb   : > { %v2379_v25 = vpop.xlane.xlu1 %647  ;;  %v2381_v26 = vpop.xlane.xlu0 %645 }
 0x1fc   : > { %3398 = vst [vmem:[#allocation22_spill] sm:$0xff] %v2379_v25  ;;  %3399 = vst [vmem:[#allocation23_spill] sm:$0xff] %v2381_v26  ;;  %vm713_vm14 = vcmp.ge.f32.partialorder %v2142_v27, %v2381_v26  ;;  %vm714_vm15 = vcmp.ge.f32.partialorder %v2147_v29, %v2379_v25 }
 0x1fd   : > { %v2389_v23 = vsel %vm713_vm14, -inf, %v2142_v27  ;;  %v2402_v24 = vsel %vm714_vm15, -inf, %v2147_v29 }
 0x1fe   : > { %775 = vmax.xlane.f32.xlu1 %v2386_v22  ;;  %805 = vmax.xlane.f32.xlu0 %v2389_v23 }
 0x1ff   : > { %v2395_v18 = vpop.xlane.xlu1 %651  ;;  %v2397_v19 = vpop.xlane.xlu0 %649 }
 0x200   : > { %3400 = vst [vmem:[#allocation24_spill] sm:$0xff] %v2395_v18  ;;  %3401 = vst [vmem:[#allocation25_spill] sm:$0xff] %v2397_v19  ;;  %vm715_vm0 = vcmp.ge.f32.partialorder %v2152_v30, %v2397_v19  ;;  %vm716_vm1 = vcmp.ge.f32.partialorder %v2155_v33, %v2395_v18 }
 0x201   : > { %v2405_v27 = vsel %vm715_vm0, -inf, %v2152_v30  ;;  %v2412_v25 = vsel %vm716_vm1, -inf, %v2155_v33 }
 0x202   : > { %807 = vmax.xlane.f32.xlu1 %v2402_v24  ;;  %809 = vmax.xlane.f32.xlu0 %v2405_v27 }
 0x206   : > { %811 = vmax.xlane.f32.xlu1 %v2412_v25 }
 0x253   : > { %v2415_v26 = vpop.xlane.xlu0 %753 }
 0x254   : > { %vm847_vm2 = vcmp.ge.f32.partialorder %v2166_v36, %v2415_v26 }
 0x255   : > { %v2420_v29 = vsel %vm847_vm2, -inf, %v2166_v36 }
 0x256   : > { %913 = vmax.xlane.f32.xlu0 %v2420_v29 }
 0x257   : > { %v2423_v30 = vpop.xlane.xlu1 %755  ;;  %v2425_v19 = vpop.xlane.xlu0 %785 }
 0x258   : > { %vm848_vm3 = vcmp.ge.f32.partialorder %v2178_v38, %v2423_v30  ;;  %vm863_vm4 = vcmp.ge.f32.partialorder %v2181_v41, %v2425_v19 }
 0x259   : > { %v2432_v33 = vsel %vm848_vm3, -inf, %v2178_v38  ;;  %v2435_v18 = vsel %vm863_vm4, -inf, %v2181_v41 }
 0x25a   : > { %915 = vmax.xlane.f32.xlu1 %v2432_v33  ;;  %945 = vmax.xlane.f32.xlu0 %v2435_v18 }
 0x25b   : > { %v2439_v36 = vpop.xlane.xlu1 %787  ;;  %v2441_v14 = vpop.xlane.xlu0 %749 }
 0x25c   : > { %vm864_vm5 = vcmp.ge.f32.partialorder %v2194_v40, %v2439_v36  ;;  %vm845_vm6 = vcmp.ge.f32.partialorder %v2197_v32, %v2441_v14 }
 0x25d   : > { %v2448_v38 = vsel %vm864_vm5, -inf, %v2194_v40  ;;  %v2451_v41 = vsel %vm845_vm6, -inf, %v2197_v32 }
 0x25e   : > { %947 = vmax.xlane.f32.xlu1 %v2448_v38  ;;  %909 = vmax.xlane.f32.xlu0 %v2451_v41 }
 0x25f   : > { %v2455_v15 = vpop.xlane.xlu1 %751  ;;  %v2457_v10 = vpop.xlane.xlu0 %781 }
 0x260   : > { %vm846_vm7 = vcmp.ge.f32.partialorder %v2213_v39, %v2455_v15  ;;  %vm861_vm8 = vcmp.ge.f32.partialorder %v2210_v44, %v2457_v10 }
 0x261   : > { %v2464_v40 = vsel %vm846_vm7, -inf, %v2213_v39  ;;  %v2467_v32 = vsel %vm861_vm8, -inf, %v2210_v44 }
 0x262   : > { %911 = vmax.xlane.f32.xlu1 %v2464_v40  ;;  %941 = vmax.xlane.f32.xlu0 %v2467_v32 }
 0x263   : > { %v2471_v11 = vpop.xlane.xlu1 %783  ;;  %v2473_v6 = vpop.xlane.xlu0 %761 }
 0x264   : > { %vm862_vm9 = vcmp.ge.f32.partialorder %v2226_v43, %v2471_v11  ;;  %vm851_vm10 = vcmp.ge.f32.partialorder %v2229_v49, %v2473_v6 }
 0x265   : > { %v2480_v39 = vsel %vm862_vm9, -inf, %v2226_v43  ;;  %v2483_v44 = vsel %vm851_vm10, -inf, %v2229_v49 }
 0x266   : > { %943 = vmax.xlane.f32.xlu1 %v2480_v39  ;;  %921 = vmax.xlane.f32.xlu0 %v2483_v44 }
 0x267   : > { %v2487_v7 = vpop.xlane.xlu1 %763  ;;  %v2489_v2 = vpop.xlane.xlu0 %793 }
 0x268   : > { %3402 = vst [vmem:[#allocation26_spill] sm:$0xff] %v2487_v7  ;;  %3403 = vst [vmem:[#allocation27_spill] sm:$0xff] %v2489_v2  ;;  %vm852_vm11 = vcmp.ge.f32.partialorder %v2242_v51, %v2487_v7  ;;  %vm867_vm12 = vcmp.ge.f32.partialorder %v2245_v53, %v2489_v2 }
 0x269   : > { %v2496_v43 = vsel %vm852_vm11, -inf, %v2242_v51  ;;  %v2499_v49 = vsel %vm867_vm12, -inf, %v2245_v53 }
 0x26a   : > { %923 = vmax.xlane.f32.xlu1 %v2496_v43  ;;  %953 = vmax.xlane.f32.xlu0 %v2499_v49 }
 0x26b   : > { %v2503_v3 = vpop.xlane.xlu1 %795  ;;  %v2505_v62 = vpop.xlane.xlu0 %757 }
 0x26c   : > { %3404 = vst [vmem:[#allocation28_spill] sm:$0xff] %v2503_v3  ;;  %3405 = vst [vmem:[#allocation29_spill] sm:$0xff] %v2505_v62  ;;  %vm868_vm13 = vcmp.ge.f32.partialorder %v2258_v54, %v2503_v3  ;;  %vm849_vm14 = vcmp.ge.f32.partialorder %v2261_v57, %v2505_v62 }
 0x26d   : > { %v2512_v51 = vsel %vm868_vm13, -inf, %v2258_v54  ;;  %v2515_v53 = vsel %vm849_vm14, -inf, %v2261_v57 }
 0x26e   : > { %955 = vmax.xlane.f32.xlu1 %v2512_v51  ;;  %917 = vmax.xlane.f32.xlu0 %v2515_v53 }
 0x26f   : > { %v2519_v63 = vpop.xlane.xlu1 %759  ;;  %v2521_v58 = vpop.xlane.xlu0 %789 }
 0x270   : > { %3406 = vst [vmem:[#allocation30_spill] sm:$0xff] %v2519_v63  ;;  %3407 = vst [vmem:[#allocation31_spill] sm:$0xff] %v2521_v58  ;;  %vm850_vm15 = vcmp.ge.f32.partialorder %v2274_v60, %v2519_v63  ;;  %vm865_vm0 = vcmp.ge.f32.partialorder %v2277_v61, %v2521_v58 }
 0x271   : > { %v2528_v54 = vsel %vm850_vm15, -inf, %v2274_v60  ;;  %v2531_v57 = vsel %vm865_vm0, -inf, %v2277_v61 }
 0x272   : > { %919 = vmax.xlane.f32.xlu1 %v2528_v54  ;;  %949 = vmax.xlane.f32.xlu0 %v2531_v57 }
 0x273   : > { %v2535_v59 = vpop.xlane.xlu1 %791  ;;  %v2537_v55 = vpop.xlane.xlu0 %769 }
 0x274   : > { %3408 = vst [vmem:[#allocation32_spill] sm:$0xff] %v2535_v59  ;;  %3409 = vst [vmem:[#allocation33_spill] sm:$0xff] %v2537_v55  ;;  %vm866_vm1 = vcmp.ge.f32.partialorder %v2290_v0, %v2535_v59  ;;  %vm855_vm2 = vcmp.ge.f32.partialorder %v2293_v1, %v2537_v55 }
 0x275   : > { %v2544_v60 = vsel %vm866_vm1, -inf, %v2290_v0  ;;  %v2547_v61 = vsel %vm855_vm2, -inf, %v2293_v1 }
 0x276   : > { %951 = vmax.xlane.f32.xlu1 %v2544_v60  ;;  %929 = vmax.xlane.f32.xlu0 %v2547_v61 }
 0x277   : > { %v2551_v58 = vpop.xlane.xlu1 %771  ;;  %v2553_v63 = vpop.xlane.xlu0 %801 }
 0x278   : > { %3410 = vst [vmem:[#allocation34_spill] sm:$0xff] %v2551_v58  ;;  %3411 = vst [vmem:[#allocation35_spill] sm:$0xff] %v2553_v63  ;;  %vm856_vm3 = vcmp.ge.f32.partialorder %v2306_v4, %v2551_v58  ;;  %vm871_vm4 = vcmp.ge.f32.partialorder %v2309_v5, %v2553_v63 }
 0x279   : > { %v2560_v0 = vsel %vm856_vm3, -inf, %v2306_v4  ;;  %v2563_v1 = vsel %vm871_vm4, -inf, %v2309_v5 }
 0x27a   : > { %931 = vmax.xlane.f32.xlu1 %v2560_v0  ;;  %961 = vmax.xlane.f32.xlu0 %v2563_v1 }
 0x27b   : > { %v2567_v55 = vpop.xlane.xlu1 %803  ;;  %v2569_v59 = vpop.xlane.xlu0 %765 }
 0x27c   : > { %3412 = vst [vmem:[#allocation36_spill] sm:$0xff] %v2567_v55  ;;  %3413 = vst [vmem:[#allocation37_spill] sm:$0xff] %v2569_v59  ;;  %vm872_vm5 = vcmp.ge.f32.partialorder %v2322_v8, %v2567_v55  ;;  %vm853_vm6 = vcmp.ge.f32.partialorder %v2325_v9, %v2569_v59 }
 0x27d   : > { %v2576_v4 = vsel %vm872_vm5, -inf, %v2322_v8  ;;  %v2579_v5 = vsel %vm853_vm6, -inf, %v2325_v9 }
 0x27e   : > { %963 = vmax.xlane.f32.xlu1 %v2576_v4  ;;  %925 = vmax.xlane.f32.xlu0 %v2579_v5 }
 0x27f   : > { %v2583_v63 = vpop.xlane.xlu1 %767  ;;  %v2585_v58 = vpop.xlane.xlu0 %797 }
 0x280   : > { %3414 = vst [vmem:[#allocation38_spill] sm:$0xff] %v2583_v63  ;;  %3415 = vst [vmem:[#allocation39_spill] sm:$0xff] %v2585_v58  ;;  %vm854_vm7 = vcmp.ge.f32.partialorder %v2338_v12, %v2583_v63  ;;  %vm869_vm8 = vcmp.ge.f32.partialorder %v2341_v13, %v2585_v58 }
 0x281   : > { %v2592_v8 = vsel %vm854_vm7, -inf, %v2338_v12  ;;  %v2595_v9 = vsel %vm869_vm8, -inf, %v2341_v13 }
 0x282   : > { %927 = vmax.xlane.f32.xlu1 %v2592_v8  ;;  %957 = vmax.xlane.f32.xlu0 %v2595_v9 }
 0x283   : > { %v2599_v59 = vpop.xlane.xlu1 %799  ;;  %v2601_v55 = vpop.xlane.xlu0 %777 }
 0x284   : > { %3416 = vst [vmem:[#allocation40_spill] sm:$0xff] %v2599_v59  ;;  %3417 = vst [vmem:[#allocation41_spill] sm:$0xff] %v2601_v55  ;;  %vm870_vm9 = vcmp.ge.f32.partialorder %v2354_v16, %v2599_v59  ;;  %vm859_vm10 = vcmp.ge.f32.partialorder %v2357_v17, %v2601_v55 }
 0x285   : > { %v2608_v12 = vsel %vm870_vm9, -inf, %v2354_v16  ;;  %v2611_v13 = vsel %vm859_vm10, -inf, %v2357_v17 }
 0x286   : > { %959 = vmax.xlane.f32.xlu1 %v2608_v12  ;;  %937 = vmax.xlane.f32.xlu0 %v2611_v13 }
 0x287   : > { %v2615_v58 = vpop.xlane.xlu1 %779  ;;  %v2617_v63 = vpop.xlane.xlu0 %773 }
 0x288   : > { %3418 = vst [vmem:[#allocation42_spill] sm:$0xff] %v2615_v58  ;;  %3419 = vst [vmem:[#allocation43_spill] sm:$0xff] %v2617_v63  ;;  %vm860_vm11 = vcmp.ge.f32.partialorder %v2370_v20, %v2615_v58  ;;  %vm857_vm12 = vcmp.ge.f32.partialorder %v2373_v21, %v2617_v63 }
 0x289   : > { %v2624_v16 = vsel %vm860_vm11, -inf, %v2370_v20  ;;  %v2627_v17 = vsel %vm857_vm12, -inf, %v2373_v21 }
 0x28a   : > { %939 = vmax.xlane.f32.xlu1 %v2624_v16  ;;  %933 = vmax.xlane.f32.xlu0 %v2627_v17 }
 0x28b   : > { %v2631_v55 = vpop.xlane.xlu1 %775  ;;  %v2633_v59 = vpop.xlane.xlu0 %805 }
 0x28c   : > { %3420 = vst [vmem:[#allocation44_spill] sm:$0xff] %v2631_v55  ;;  %3421 = vst [vmem:[#allocation45_spill] sm:$0xff] %v2633_v59  ;;  %vm858_vm13 = vcmp.ge.f32.partialorder %v2386_v22, %v2631_v55  ;;  %vm873_vm14 = vcmp.ge.f32.partialorder %v2389_v23, %v2633_v59 }
 0x28d   : > { %v2640_v20 = vsel %vm858_vm13, -inf, %v2386_v22  ;;  %v2643_v21 = vsel %vm873_vm14, -inf, %v2389_v23 }
 0x28e   : > { %935 = vmax.xlane.f32.xlu1 %v2640_v20  ;;  %965 = vmax.xlane.f32.xlu0 %v2643_v21 }
 0x28f   : > { %v2647_v63 = vpop.xlane.xlu1 %807  ;;  %v2649_v58 = vpop.xlane.xlu0 %809 }
 0x290   : > { %3422 = vst [vmem:[#allocation46_spill] sm:$0xff] %v2647_v63  ;;  %3423 = vst [vmem:[#allocation47_spill] sm:$0xff] %v2649_v58  ;;  %vm874_vm15 = vcmp.ge.f32.partialorder %v2402_v24, %v2647_v63  ;;  %vm875_vm0 = vcmp.ge.f32.partialorder %v2405_v27, %v2649_v58 }
 0x291   : > { %v2656_v22 = vsel %vm874_vm15, -inf, %v2402_v24  ;;  %v2659_v23 = vsel %vm875_vm0, -inf, %v2405_v27 }
 0x292   : > { %967 = vmax.xlane.f32.xlu1 %v2656_v22  ;;  %969 = vmax.xlane.f32.xlu0 %v2659_v23 }
 0x293   : > { %v2663_v59 = vpop.xlane.xlu1 %811 }
 0x294   : > { %3424 = vst [vmem:[#allocation48_spill] sm:$0xff] %v2663_v59  ;;  %vm876_vm1 = vcmp.ge.f32.partialorder %v2412_v25, %v2663_v59 }
 0x295   : > { %v2668_v63 = vsel %vm876_vm1, -inf, %v2412_v25 }
 0x296   : > { %971 = vmax.xlane.f32.xlu1 %v2668_v63 }
 0x2e3   : > { %v2671_v58 = vpop.xlane.xlu0 %913 }
 0x2e4   : > { %vm1007_vm2 = vcmp.ge.f32.partialorder %v2420_v29, %v2671_v58 }
 0x2e5   : > { %v2676_v24 = vsel %vm1007_vm2, -inf, %v2420_v29 }
 0x2e6   : > { %1073 = vmax.xlane.f32.xlu0 %v2676_v24 }
 0x2e7   : > { %v2679_v27 = vpop.xlane.xlu1 %915  ;;  %v2681_v55 = vpop.xlane.xlu0 %945 }
 0x2e8   : > { %vm1008_vm3 = vcmp.ge.f32.partialorder %v2432_v33, %v2679_v27  ;;  %vm1023_vm4 = vcmp.ge.f32.partialorder %v2435_v18, %v2681_v55 }
 0x2e9   : > { %v2688_v25 = vsel %vm1008_vm3, -inf, %v2432_v33  ;;  %v2691_v59 = vsel %vm1023_vm4, -inf, %v2435_v18 }
 0x2ea   : > { %1075 = vmax.xlane.f32.xlu1 %v2688_v25  ;;  %1105 = vmax.xlane.f32.xlu0 %v2691_v59 }
 0x2eb   : > { %v2695_v29 = vpop.xlane.xlu1 %947  ;;  %v2697_v62 = vpop.xlane.xlu0 %909 }
 0x2ec   : > { %vm1024_vm5 = vcmp.ge.f32.partialorder %v2448_v38, %v2695_v29  ;;  %vm1005_vm6 = vcmp.ge.f32.partialorder %v2451_v41, %v2697_v62 }
 0x2ed   : > { %v2704_v33 = vsel %vm1024_vm5, -inf, %v2448_v38  ;;  %v2707_v18 = vsel %vm1005_vm6, -inf, %v2451_v41 }
 0x2ee   : > { %1107 = vmax.xlane.f32.xlu1 %v2704_v33  ;;  %1069 = vmax.xlane.f32.xlu0 %v2707_v18 }
 0x2ef   : > { %v2711_v56 = vpop.xlane.xlu1 %911  ;;  %v2713_v3 = vpop.xlane.xlu0 %941 }
 0x2f0   : > { %vm1006_vm7 = vcmp.ge.f32.partialorder %v2464_v40, %v2711_v56  ;;  %vm1021_vm8 = vcmp.ge.f32.partialorder %v2467_v32, %v2713_v3 }
 0x2f1   : > { %v2720_v38 = vsel %vm1006_vm7, -inf, %v2464_v40  ;;  %v2723_v41 = vsel %vm1021_vm8, -inf, %v2467_v32 }
 0x2f2   : > { %1071 = vmax.xlane.f32.xlu1 %v2720_v38  ;;  %1101 = vmax.xlane.f32.xlu0 %v2723_v41 }
 0x2f3   : > { %v2727_v50 = vpop.xlane.xlu1 %943  ;;  %v2729_v2 = vpop.xlane.xlu0 %921 }
 0x2f4   : > { %vm1022_vm9 = vcmp.ge.f32.partialorder %v2480_v39, %v2727_v50  ;;  %vm1011_vm10 = vcmp.ge.f32.partialorder %v2483_v44, %v2729_v2 }
 0x2f5   : > { %v2736_v40 = vsel %vm1022_vm9, -inf, %v2480_v39  ;;  %v2739_v32 = vsel %vm1011_vm10, -inf, %v2483_v44 }
 0x2f6   : > { %3425 = vst [vmem:[#allocation49_spill] sm:$0xff] %v2736_v40  ;;  %3426 = vst [vmem:[#allocation50_spill] sm:$0xff] %v2739_v32  ;;  %1103 = vmax.xlane.f32.xlu1 %v2736_v40  ;;  %1081 = vmax.xlane.f32.xlu0 %v2739_v32 }
 0x2f7   : > { %v2743_v52 = vpop.xlane.xlu1 %923  ;;  %v2745_v7 = vpop.xlane.xlu0 %953 }
 0x2f8   : > { %vm1012_vm11 = vcmp.ge.f32.partialorder %v2496_v43, %v2743_v52  ;;  %vm1027_vm12 = vcmp.ge.f32.partialorder %v2499_v49, %v2745_v7 }
 0x2f9   : > { %v2752_v39 = vsel %vm1012_vm11, -inf, %v2496_v43  ;;  %v2755_v44 = vsel %vm1027_vm12, -inf, %v2499_v49 }
 0x2fa   : > { %3427 = vst [vmem:[#allocation51_spill] sm:$0xff] %v2752_v39  ;;  %3428 = vst [vmem:[#allocation52_spill] sm:$0xff] %v2755_v44  ;;  %1083 = vmax.xlane.f32.xlu1 %v2752_v39  ;;  %1113 = vmax.xlane.f32.xlu0 %v2755_v44 }
 0x2fb   : > { %v2759_v32 = vpop.xlane.xlu1 %955  ;;  %v2761_v40 = vpop.xlane.xlu0 %917 }
 0x2fc   : > { %vm1028_vm13 = vcmp.ge.f32.partialorder %v2512_v51, %v2759_v32  ;;  %vm1009_vm14 = vcmp.ge.f32.partialorder %v2515_v53, %v2761_v40 }
 0x2fd   : > { %v2768_v43 = vsel %vm1028_vm13, -inf, %v2512_v51  ;;  %v2771_v49 = vsel %vm1009_vm14, -inf, %v2515_v53 }
 0x2fe   : > { %3429 = vst [vmem:[#allocation53_spill] sm:$0xff] %v2768_v43  ;;  %3430 = vst [vmem:[#allocation54_spill] sm:$0xff] %v2771_v49  ;;  %1115 = vmax.xlane.f32.xlu1 %v2768_v43  ;;  %1077 = vmax.xlane.f32.xlu0 %v2771_v49 }
 0x2ff   : > { %v2775_v44 = vpop.xlane.xlu1 %919  ;;  %v2777_v39 = vpop.xlane.xlu0 %949 }
 0x300   : > { %vm1010_vm15 = vcmp.ge.f32.partialorder %v2528_v54, %v2775_v44  ;;  %vm1025_vm0 = vcmp.ge.f32.partialorder %v2531_v57, %v2777_v39 }
 0x301   : > { %v2784_v51 = vsel %vm1010_vm15, -inf, %v2528_v54  ;;  %v2787_v53 = vsel %vm1025_vm0, -inf, %v2531_v57 }
 0x302   : > { %3431 = vst [vmem:[#allocation55_spill] sm:$0xff] %v2784_v51  ;;  %3432 = vst [vmem:[#allocation56_spill] sm:$0xff] %v2787_v53  ;;  %1079 = vmax.xlane.f32.xlu1 %v2784_v51  ;;  %1109 = vmax.xlane.f32.xlu0 %v2787_v53 }
 0x303   : > { %v2791_v49 = vpop.xlane.xlu1 %951  ;;  %v2793_v43 = vpop.xlane.xlu0 %929 }
 0x304   : > { %vm1026_vm1 = vcmp.ge.f32.partialorder %v2544_v60, %v2791_v49  ;;  %vm1015_vm2 = vcmp.ge.f32.partialorder %v2547_v61, %v2793_v43 }
 0x305   : > { %v2800_v54 = vsel %vm1026_vm1, -inf, %v2544_v60  ;;  %v2803_v57 = vsel %vm1015_vm2, -inf, %v2547_v61 }
 0x306   : > { %3433 = vst [vmem:[#allocation57_spill] sm:$0xff] %v2800_v54  ;;  %3434 = vst [vmem:[#allocation58_spill] sm:$0xff] %v2803_v57  ;;  %1111 = vmax.xlane.f32.xlu1 %v2800_v54  ;;  %1089 = vmax.xlane.f32.xlu0 %v2803_v57 }
 0x307   : > { %v2807_v53 = vpop.xlane.xlu1 %931  ;;  %v2809_v51 = vpop.xlane.xlu0 %961 }
 0x308   : > { %vm1016_vm3 = vcmp.ge.f32.partialorder %v2560_v0, %v2807_v53  ;;  %vm1031_vm4 = vcmp.ge.f32.partialorder %v2563_v1, %v2809_v51 }
 0x309   : > { %v2816_v60 = vsel %vm1016_vm3, -inf, %v2560_v0  ;;  %v2819_v61 = vsel %vm1031_vm4, -inf, %v2563_v1 }
 0x30a   : > { %3435 = vst [vmem:[#allocation59_spill] sm:$0xff] %v2816_v60  ;;  %3436 = vst [vmem:[#allocation60_spill] sm:$0xff] %v2819_v61  ;;  %1091 = vmax.xlane.f32.xlu1 %v2816_v60  ;;  %1121 = vmax.xlane.f32.xlu0 %v2819_v61 }
 0x30b   : > { %v2823_v57 = vpop.xlane.xlu1 %963  ;;  %v2825_v54 = vpop.xlane.xlu0 %925 }
 0x30c   : > { %vm1032_vm5 = vcmp.ge.f32.partialorder %v2576_v4, %v2823_v57  ;;  %vm1013_vm6 = vcmp.ge.f32.partialorder %v2579_v5, %v2825_v54 }
 0x30d   : > { %v2832_v0 = vsel %vm1032_vm5, -inf, %v2576_v4  ;;  %v2835_v1 = vsel %vm1013_vm6, -inf, %v2579_v5 }
 0x30e   : > { %3437 = vst [vmem:[#allocation61_spill] sm:$0xff] %v2832_v0  ;;  %3438 = vst [vmem:[#allocation62_spill] sm:$0xff] %v2835_v1  ;;  %1123 = vmax.xlane.f32.xlu1 %v2832_v0  ;;  %1085 = vmax.xlane.f32.xlu0 %v2835_v1 }
 0x30f   : > { %v2839_v61 = vpop.xlane.xlu1 %927  ;;  %v2841_v60 = vpop.xlane.xlu0 %957 }
 0x310   : > { %vm1014_vm7 = vcmp.ge.f32.partialorder %v2592_v8, %v2839_v61  ;;  %vm1029_vm8 = vcmp.ge.f32.partialorder %v2595_v9, %v2841_v60 }
 0x311   : > { %v2848_v4 = vsel %vm1014_vm7, -inf, %v2592_v8  ;;  %v2851_v5 = vsel %vm1029_vm8, -inf, %v2595_v9 }
 0x312   : > { %3439 = vst [vmem:[#allocation63_spill] sm:$0xff] %v2848_v4  ;;  %3440 = vst [vmem:[#allocation64_spill] sm:$0xff] %v2851_v5  ;;  %1087 = vmax.xlane.f32.xlu1 %v2848_v4  ;;  %1117 = vmax.xlane.f32.xlu0 %v2851_v5 }
 0x313   : > { %v2855_v1 = vpop.xlane.xlu1 %959  ;;  %v2857_v0 = vpop.xlane.xlu0 %937 }
 0x314   : > { %vm1030_vm9 = vcmp.ge.f32.partialorder %v2608_v12, %v2855_v1  ;;  %vm1019_vm10 = vcmp.ge.f32.partialorder %v2611_v13, %v2857_v0 }
 0x315   : > { %v2864_v8 = vsel %vm1030_vm9, -inf, %v2608_v12  ;;  %v2867_v9 = vsel %vm1019_vm10, -inf, %v2611_v13 }
 0x316   : > { %3441 = vst [vmem:[#allocation65_spill] sm:$0xff] %v2864_v8  ;;  %3442 = vst [vmem:[#allocation66_spill] sm:$0xff] %v2867_v9  ;;  %1119 = vmax.xlane.f32.xlu1 %v2864_v8  ;;  %1097 = vmax.xlane.f32.xlu0 %v2867_v9 }
 0x317   : > { %v2871_v5 = vpop.xlane.xlu1 %939  ;;  %v2873_v4 = vpop.xlane.xlu0 %933 }
 0x318   : > { %vm1020_vm11 = vcmp.ge.f32.partialorder %v2624_v16, %v2871_v5  ;;  %vm1017_vm12 = vcmp.ge.f32.partialorder %v2627_v17, %v2873_v4 }
 0x319   : > { %v2880_v12 = vsel %vm1020_vm11, -inf, %v2624_v16  ;;  %v2883_v13 = vsel %vm1017_vm12, -inf, %v2627_v17 }
 0x31a   : > { %3443 = vst [vmem:[#allocation67_spill] sm:$0xff] %v2880_v12  ;;  %3444 = vst [vmem:[#allocation68_spill] sm:$0xff] %v2883_v13  ;;  %1099 = vmax.xlane.f32.xlu1 %v2880_v12  ;;  %1093 = vmax.xlane.f32.xlu0 %v2883_v13 }
 0x31b   : > { %v2887_v9 = vpop.xlane.xlu1 %935  ;;  %v2889_v8 = vpop.xlane.xlu0 %965 }
 0x31c   : > { %vm1018_vm13 = vcmp.ge.f32.partialorder %v2640_v20, %v2887_v9  ;;  %vm1033_vm14 = vcmp.ge.f32.partialorder %v2643_v21, %v2889_v8 }
 0x31d   : > { %v2896_v16 = vsel %vm1018_vm13, -inf, %v2640_v20  ;;  %v2899_v17 = vsel %vm1033_vm14, -inf, %v2643_v21 }
 0x31e   : > { %3445 = vst [vmem:[#allocation69_spill] sm:$0xff] %v2896_v16  ;;  %3446 = vst [vmem:[#allocation70_spill] sm:$0xff] %v2899_v17  ;;  %1095 = vmax.xlane.f32.xlu1 %v2896_v16  ;;  %1125 = vmax.xlane.f32.xlu0 %v2899_v17 }
 0x31f   : > { %v2903_v13 = vpop.xlane.xlu1 %967  ;;  %v2905_v12 = vpop.xlane.xlu0 %969 }
 0x320   : > { %3447 = vst [vmem:[#allocation71_spill] sm:$0xff] %v2903_v13  ;;  %3448 = vst [vmem:[#allocation72_spill] sm:$0xff] %v2905_v12  ;;  %vm1034_vm15 = vcmp.ge.f32.partialorder %v2656_v22, %v2903_v13  ;;  %vm1035_vm0 = vcmp.ge.f32.partialorder %v2659_v23, %v2905_v12 }
 0x321   : > { %v2912_v20 = vsel %vm1034_vm15, -inf, %v2656_v22  ;;  %v2915_v21 = vsel %vm1035_vm0, -inf, %v2659_v23  ;;  %v815_v22 = vadd.f32 %v2415_v26, %v2161_v35  ;;  %v832_v26 = vadd.f32 %v2439_v36, %v2187_v31 }
 0x322   : > { %3449 = vst [vmem:[#allocation73_spill] sm:$0xff] %v2912_v20  ;;  %3450 = vst [vmem:[#allocation74_spill] sm:$0xff] %v2915_v21  ;;  %1127 = vmax.xlane.f32.xlu1 %v2912_v20  ;;  %1129 = vmax.xlane.f32.xlu0 %v2915_v21  ;;  %v816_v20 = vadd.f32 %v2423_v30, %v2171_v28  ;;  %v831_v21 = vadd.f32 %v2425_v19, %v2159_v34 }
 0x323   : > { %v2919_v17 = vpop.xlane.xlu1 %971  ;;  %v975_v23 = vadd.f32 %v2671_v58, %v815_v22  ;;  %v813_v35 = vadd.f32 %v2441_v14, %v2173_v37  ;;  %v814_v37 = vadd.f32 %v2455_v15, %v2205_v46  ;;  %v829_v14 = vadd.f32 %v2457_v10, %v2189_v42 }
 0x324   : > { %3451 = vst [vmem:[#allocation75_spill] sm:$0xff] %v2919_v17  ;;  %vm1036_vm1 = vcmp.ge.f32.partialorder %v2668_v63, %v2919_v17  ;;  %v976_v17 = vadd.f32 %v2679_v27, %v816_v20  ;;  %v830_v42 = vadd.f32 %v2471_v11, %v2203_v45  ;;  %v819_v10 = vadd.f32 %v2473_v6, %v2221_v48  ;;  %v3453_v48 = vld [vmem:[#allocation26_spill] sm:$0xff]  ;;  %v3454_v11 = vld [vmem:[#allocation5_spill] sm:$0xff]  ;;  %v3455_v20 = vld [vmem:[#allocation27_spill] sm:$0xff] }
 0x325   : > { %v2924_v13 = vsel %vm1036_vm1, -inf, %v2668_v63  ;;  %v973_v31 = vadd.f32 %v2697_v62, %v813_v35  ;;  %v989_v46 = vadd.f32 %v2713_v3, %v829_v14  ;;  %v820_v6 = vadd.f32 %v3453_v48, %v2219_v47 }
 0x326   : > { %3452 = vst [vmem:[#allocation76_spill] sm:$0xff] %v2924_v13  ;;  %1131 = vmax.xlane.f32.xlu1 %v2924_v13  ;;  %v991_v13 = vadd.f32 %v2681_v55, %v831_v21  ;;  %v979_v45 = vadd.f32 %v2729_v2, %v819_v10  ;;  %v835_v21 = vadd.f32 %v3455_v20, %v3454_v11  ;;  %v3465_v10 = vld [vmem:[#allocation30_spill] sm:$0xff] }
 0x327   : > { %v980_v35 = vadd.f32 %v2743_v52, %v820_v6  ;;  %v3468_v6 = vld [vmem:[#allocation53_spill] sm:$0xff]  ;;  %v3469_v20 = vld [vmem:[#allocation54_spill] sm:$0xff] }
 0x328   : > { %v995_v47 = vadd.f32 %v2745_v7, %v835_v21 }
 0x373   : > { %v1074_v12 = vpop.xlane.xlu0 %1073 }
 0x374   : > { %v2934_v16 = vadd.f32 %v1074_v12, %v975_v23  ;;  %vm1167_vm2 = vcmp.ge.f32.partialorder %v2676_v24, %v1074_v12 }
 0x375   : > { %v1199_v63 = vsel %vm1167_vm2, -inf, %v2676_v24  ;;  %v992_v24 = vadd.f32 %v2695_v29, %v832_v26  ;;  %v974_v29 = vadd.f32 %v2711_v56, %v814_v37  ;;  %v3456_v26 = vld [vmem:[#allocation49_spill] sm:$0xff] }
 0x376   : > { %1233 = vmax.xlane.f32.xlu0 %v1199_v63 }
 0x377   : > { %v1076_v28 = vpop.xlane.xlu1 %1075  ;;  %v1106_v58 = vpop.xlane.xlu0 %1105 }
 0x378   : > { %v2944_v34 = vadd.f32 %v1076_v28, %v976_v17  ;;  %vm1168_vm3 = vcmp.ge.f32.partialorder %v2688_v25, %v1076_v28  ;;  %v2947_v19 = vadd.f32 %v1106_v58, %v991_v13  ;;  %vm1183_vm4 = vcmp.ge.f32.partialorder %v2691_v59, %v1106_v58  ;;  %v3458_v28 = vld [vmem:[#allocation4_spill] sm:$0xff] }
 0x379   : > { %v1200_v30 = vsel %vm1168_vm3, -inf, %v2688_v25  ;;  %v1215_v55 = vsel %vm1183_vm4, -inf, %v2691_v59  ;;  %v3459_v58 = vld [vmem:[#allocation28_spill] sm:$0xff] }
 0x37a   : > { %1235 = vmax.xlane.f32.xlu1 %v1200_v30  ;;  %1265 = vmax.xlane.f32.xlu0 %v1215_v55  ;;  %v836_v30 = vadd.f32 %v3459_v58, %v3458_v28  ;;  %v3460_v55 = vld [vmem:[#allocation7_spill] sm:$0xff] }
 0x37b   : > { %v1108_v36 = vpop.xlane.xlu1 %1107  ;;  %v1070_v27 = vpop.xlane.xlu0 %1069 }
 0x37c   : > { %v2958_v12 = vadd.f32 %v1108_v36, %v992_v24  ;;  %vm1184_vm5 = vcmp.ge.f32.partialorder %v2704_v33, %v1108_v36  ;;  %v2961_v25 = vadd.f32 %v1070_v27, %v973_v31  ;;  %vm1165_vm6 = vcmp.ge.f32.partialorder %v2707_v18, %v1070_v27  ;;  %v3461_v24 = vld [vmem:[#allocation29_spill] sm:$0xff]  ;;  %v3462_v27 = vld [vmem:[#allocation51_spill] sm:$0xff] }
 0x37d   : > { %v1216_v59 = vsel %vm1184_vm5, -inf, %v2704_v33  ;;  %v1197_v62 = vsel %vm1165_vm6, -inf, %v2707_v18  ;;  %v990_v18 = vadd.f32 %v2727_v50, %v830_v42  ;;  %v817_v31 = vadd.f32 %v3461_v24, %v3460_v55  ;;  %v3464_v42 = vld [vmem:[#allocation6_spill] sm:$0xff]  ;;  %v3475_v24 = vld [vmem:[#allocation56_spill] sm:$0xff] }
 0x37e   : > { %1267 = vmax.xlane.f32.xlu1 %v1216_v59  ;;  %1229 = vmax.xlane.f32.xlu0 %v1197_v62  ;;  %v3463_v62 = vld [vmem:[#allocation52_spill] sm:$0xff] }
 0x37f   : > { %v1072_v15 = vpop.xlane.xlu1 %1071  ;;  %v1102_v13 = vpop.xlane.xlu0 %1101 }
 0x380   : > { %v2972_v17 = vadd.f32 %v1072_v15, %v974_v29  ;;  %vm1166_vm7 = vcmp.ge.f32.partialorder %v2720_v38, %v1072_v15  ;;  %v2975_v33 = vadd.f32 %v1102_v13, %v989_v46  ;;  %vm1181_vm8 = vcmp.ge.f32.partialorder %v2723_v41, %v1102_v13  ;;  %v3466_v13 = vld [vmem:[#allocation9_spill] sm:$0xff] }
 0x381   : > { %v1198_v56 = vsel %vm1166_vm7, -inf, %v2720_v38  ;;  %v1213_v3 = vsel %vm1181_vm8, -inf, %v2723_v41  ;;  %v3457_v41 = vld [vmem:[#allocation50_spill] sm:$0xff]  ;;  %v996_v29 = vadd.f32 %v2759_v32, %v836_v30  ;;  %v977_v46 = vadd.f32 %v2761_v40, %v817_v31  ;;  %v3474_v30 = vld [vmem:[#allocation55_spill] sm:$0xff] }
 0x382   : > { %1231 = vmax.xlane.f32.xlu1 %v1198_v56  ;;  %1261 = vmax.xlane.f32.xlu0 %v1213_v3  ;;  %v818_v15 = vadd.f32 %v3465_v10, %v3464_v42  ;;  %v3467_v56 = vld [vmem:[#allocation31_spill] sm:$0xff] }
 0x383   : > { %v1104_v22 = vpop.xlane.xlu1 %1103  ;;  %v1082_v23 = vpop.xlane.xlu0 %1081  ;;  %v833_v3 = vadd.f32 %v3467_v56, %v3466_v13  ;;  %v3481_v56 = vld [vmem:[#allocation58_spill] sm:$0xff] }
 0x384   : > { %v2986_v63 = vadd.f32 %v1104_v22, %v990_v18  ;;  %vm1182_vm9 = vcmp.ge.f32.partialorder %v3456_v26, %v1104_v22  ;;  %v2989_v38 = vadd.f32 %v1082_v23, %v979_v45  ;;  %vm1171_vm10 = vcmp.ge.f32.partialorder %v3457_v41, %v1082_v23  ;;  %v3470_v23 = vld [vmem:[#allocation8_spill] sm:$0xff] }
 0x385   : > { %v1214_v50 = vsel %vm1182_vm9, -inf, %v3456_v26  ;;  %v1203_v2 = vsel %vm1171_vm10, -inf, %v3457_v41  ;;  %v978_v21 = vadd.f32 %v2775_v44, %v818_v15  ;;  %v993_v22 = vadd.f32 %v2777_v39, %v833_v3  ;;  %v3471_v26 = vld [vmem:[#allocation32_spill] sm:$0xff]  ;;  %v3480_v15 = vld [vmem:[#allocation57_spill] sm:$0xff] }
 0x386   : > { %1263 = vmax.xlane.f32.xlu1 %v1214_v50  ;;  %1241 = vmax.xlane.f32.xlu0 %v1203_v2  ;;  %v834_v41 = vadd.f32 %v3471_v26, %v3470_v23  ;;  %v3472_v50 = vld [vmem:[#allocation11_spill] sm:$0xff]  ;;  %v3473_v2 = vld [vmem:[#allocation33_spill] sm:$0xff] }
 0x387   : > { %v1084_v37 = vpop.xlane.xlu1 %1083  ;;  %v1114_v14 = vpop.xlane.xlu0 %1113 }
 0x388   : > { %v3000_v36 = vadd.f32 %v1084_v37, %v980_v35  ;;  %vm1172_vm11 = vcmp.ge.f32.partialorder %v3462_v27, %v1084_v37  ;;  %v3003_v59 = vadd.f32 %v1114_v14, %v995_v47  ;;  %vm1187_vm12 = vcmp.ge.f32.partialorder %v3463_v62, %v1114_v14  ;;  %v3476_v14 = vld [vmem:[#allocation10_spill] sm:$0xff] }
 0x389   : > { %v1204_v52 = vsel %vm1172_vm11, -inf, %v3462_v27  ;;  %v1219_v7 = vsel %vm1187_vm12, -inf, %v3463_v62  ;;  %v823_v35 = vadd.f32 %v3473_v2, %v3472_v50  ;;  %v994_v31 = vadd.f32 %v2791_v49, %v834_v41  ;;  %v3477_v27 = vld [vmem:[#allocation34_spill] sm:$0xff]  ;;  %v3486_v41 = vld [vmem:[#allocation59_spill] sm:$0xff]  ;;  %v3487_v2 = vld [vmem:[#allocation60_spill] sm:$0xff] }
 0x38a   : > { %1243 = vmax.xlane.f32.xlu1 %v1204_v52  ;;  %1273 = vmax.xlane.f32.xlu0 %v1219_v7  ;;  %v824_v62 = vadd.f32 %v3477_v27, %v3476_v14  ;;  %v3478_v52 = vld [vmem:[#allocation13_spill] sm:$0xff]  ;;  %v3479_v7 = vld [vmem:[#allocation35_spill] sm:$0xff] }
 0x38b   : > { %v1116_v18 = vpop.xlane.xlu1 %1115  ;;  %v1078_v45 = vpop.xlane.xlu0 %1077  ;;  %v983_v37 = vadd.f32 %v2793_v43, %v823_v35 }
 0x38c   : > { %v3014_v48 = vadd.f32 %v1116_v18, %v996_v29  ;;  %vm1188_vm13 = vcmp.ge.f32.partialorder %v3468_v6, %v1116_v18  ;;  %v3017_v11 = vadd.f32 %v1078_v45, %v977_v46  ;;  %vm1169_vm14 = vcmp.ge.f32.partialorder %v3469_v20, %v1078_v45  ;;  %v3482_v45 = vld [vmem:[#allocation12_spill] sm:$0xff] }
 0x38d   : > { %v1220_v40 = vsel %vm1188_vm13, -inf, %v3468_v6  ;;  %v1201_v32 = vsel %vm1169_vm14, -inf, %v3469_v20  ;;  %v839_v29 = vadd.f32 %v3479_v7, %v3478_v52  ;;  %v984_v3 = vadd.f32 %v2807_v53, %v824_v62  ;;  %v3483_v6 = vld [vmem:[#allocation36_spill] sm:$0xff]  ;;  %v3492_v62 = vld [vmem:[#allocation61_spill] sm:$0xff]  ;;  %v3493_v7 = vld [vmem:[#allocation62_spill] sm:$0xff] }
 0x38e   : > { %1275 = vmax.xlane.f32.xlu1 %v1220_v40  ;;  %1237 = vmax.xlane.f32.xlu0 %v1201_v32  ;;  %v840_v20 = vadd.f32 %v3483_v6, %v3482_v45  ;;  %v3484_v40 = vld [vmem:[#allocation15_spill] sm:$0xff]  ;;  %v3485_v32 = vld [vmem:[#allocation37_spill] sm:$0xff] }
 0x38f   : > { %v1080_v47 = vpop.xlane.xlu1 %1079  ;;  %v1110_v28 = vpop.xlane.xlu0 %1109  ;;  %v999_v18 = vadd.f32 %v2809_v51, %v839_v29 }
 0x390   : > { %v3028_v58 = vadd.f32 %v1080_v47, %v978_v21  ;;  %vm1170_vm15 = vcmp.ge.f32.partialorder %v3474_v30, %v1080_v47  ;;  %v3031_v55 = vadd.f32 %v1110_v28, %v993_v22  ;;  %vm1185_vm0 = vcmp.ge.f32.partialorder %v3475_v24, %v1110_v28  ;;  %v3488_v28 = vld [vmem:[#allocation14_spill] sm:$0xff] }
 0x391   : > { %v1202_v39 = vsel %vm1170_vm15, -inf, %v3474_v30  ;;  %v1217_v44 = vsel %vm1185_vm0, -inf, %v3475_v24  ;;  %v821_v21 = vadd.f32 %v3485_v32, %v3484_v40  ;;  %v1000_v35 = vadd.f32 %v2823_v57, %v840_v20  ;;  %v3489_v30 = vld [vmem:[#allocation38_spill] sm:$0xff]  ;;  %v3498_v20 = vld [vmem:[#allocation63_spill] sm:$0xff]  ;;  %v3499_v32 = vld [vmem:[#allocation64_spill] sm:$0xff] }
 0x392   : > { %1239 = vmax.xlane.f32.xlu1 %v1202_v39  ;;  %1269 = vmax.xlane.f32.xlu0 %v1217_v44  ;;  %v822_v24 = vadd.f32 %v3489_v30, %v3488_v28  ;;  %v3490_v39 = vld [vmem:[#allocation17_spill] sm:$0xff]  ;;  %v3491_v44 = vld [vmem:[#allocation39_spill] sm:$0xff] }
 0x393   : > { %v1112_v46 = vpop.xlane.xlu1 %1111  ;;  %v1090_v42 = vpop.xlane.xlu0 %1089  ;;  %v981_v47 = vadd.f32 %v2825_v54, %v821_v21 }
 0x394   : > { %v3042_v10 = vadd.f32 %v1112_v46, %v994_v31  ;;  %vm1186_vm1 = vcmp.ge.f32.partialorder %v3480_v15, %v1112_v46  ;;  %v3045_v13 = vadd.f32 %v1090_v42, %v983_v37  ;;  %vm1175_vm2 = vcmp.ge.f32.partialorder %v3481_v56, %v1090_v42  ;;  %v3494_v42 = vld [vmem:[#allocation16_spill] sm:$0xff] }
 0x395   : > { %v1218_v43 = vsel %vm1186_vm1, -inf, %v3480_v15  ;;  %v1207_v49 = vsel %vm1175_vm2, -inf, %v3481_v56  ;;  %v837_v31 = vadd.f32 %v3491_v44, %v3490_v39  ;;  %v982_v29 = vadd.f32 %v2839_v61, %v822_v24  ;;  %v3495_v15 = vld [vmem:[#allocation40_spill] sm:$0xff]  ;;  %v3504_v24 = vld [vmem:[#allocation65_spill] sm:$0xff]  ;;  %v3505_v44 = vld [vmem:[#allocation66_spill] sm:$0xff] }
 0x396   : > { %1271 = vmax.xlane.f32.xlu1 %v1218_v43  ;;  %1249 = vmax.xlane.f32.xlu0 %v1207_v49  ;;  %v838_v56 = vadd.f32 %v3495_v15, %v3494_v42  ;;  %v3496_v43 = vld [vmem:[#allocation19_spill] sm:$0xff]  ;;  %v3497_v49 = vld [vmem:[#allocation41_spill] sm:$0xff]  ;;  %vm1398_vm2 = vcmask 130112  }
 0x397   : > { %v1092_v22 = vpop.xlane.xlu1 %1091  ;;  %v1122_v23 = vpop.xlane.xlu0 %1121  ;;  %v997_v46 = vadd.f32 %v2841_v60, %v837_v31 }
 0x398   : > { %v3056_v26 = vadd.f32 %v1092_v22, %v984_v3  ;;  %vm1176_vm3 = vcmp.ge.f32.partialorder %v3486_v41, %v1092_v22  ;;  %v3059_v50 = vadd.f32 %v1122_v23, %v999_v18  ;;  %vm1191_vm4 = vcmp.ge.f32.partialorder %v3487_v2, %v1122_v23  ;;  %v3500_v23 = vld [vmem:[#allocation18_spill] sm:$0xff] }
 0x399   : > { %v1208_v51 = vsel %vm1176_vm3, -inf, %v3486_v41  ;;  %v1223_v53 = vsel %vm1191_vm4, -inf, %v3487_v2  ;;  %v827_v3 = vadd.f32 %v3497_v49, %v3496_v43  ;;  %v998_v21 = vadd.f32 %v2855_v1, %v838_v56  ;;  %v3501_v41 = vld [vmem:[#allocation42_spill] sm:$0xff]  ;;  %v3510_v56 = vld [vmem:[#allocation67_spill] sm:$0xff]  ;;  %v3511_v49 = vld [vmem:[#allocation68_spill] sm:$0xff] }
 0x39a   : > { %1251 = vmax.xlane.f32.xlu1 %v1208_v51  ;;  %1281 = vmax.xlane.f32.xlu0 %v1223_v53  ;;  %v828_v2 = vadd.f32 %v3501_v41, %v3500_v23  ;;  %v3502_v51 = vld [vmem:[#allocation21_spill] sm:$0xff]  ;;  %v3503_v53 = vld [vmem:[#allocation43_spill] sm:$0xff]  ;;  %v3515_v41 = vld [vmem:[#allocation70_spill] sm:$0xff]  ;;  %vm1535_vm3 = vcmask 1041409   ;;  %vm1537_vm4 = vcmask 1042434  }
 0x39b   : > { %v1124_v37 = vpop.xlane.xlu1 %1123  ;;  %v1086_v14 = vpop.xlane.xlu0 %1085  ;;  %v987_v22 = vadd.f32 %v2857_v0, %v827_v3 }
 0x39c   : > { %v3070_v27 = vadd.f32 %v1124_v37, %v1000_v35  ;;  %vm1192_vm5 = vcmp.ge.f32.partialorder %v3492_v62, %v1124_v37  ;;  %v3073_v52 = vadd.f32 %v1086_v14, %v981_v47  ;;  %vm1173_vm6 = vcmp.ge.f32.partialorder %v3493_v7, %v1086_v14  ;;  %v3506_v14 = vld [vmem:[#allocation20_spill] sm:$0xff] }
 0x39d   : > { %v1224_v54 = vsel %vm1192_vm5, -inf, %v3492_v62  ;;  %v1205_v57 = vsel %vm1173_vm6, -inf, %v3493_v7  ;;  %v825_v35 = vadd.f32 %v3503_v53, %v3502_v51  ;;  %v988_v31 = vadd.f32 %v2871_v5, %v828_v2  ;;  %v3507_v62 = vld [vmem:[#allocation44_spill] sm:$0xff] }
 0x39e   : > { %1283 = vmax.xlane.f32.xlu1 %v1224_v54  ;;  %1245 = vmax.xlane.f32.xlu0 %v1205_v57  ;;  %v826_v7 = vadd.f32 %v3507_v62, %v3506_v14  ;;  %v3508_v54 = vld [vmem:[#allocation23_spill] sm:$0xff]  ;;  %v3509_v57 = vld [vmem:[#allocation45_spill] sm:$0xff]  ;;  %v3520_v14 = vlaneseq  ;;  %vm1539_vm5 = vcmask 1043459   ;;  %vm1541_vm6 = vcmask 1044484  }
 0x39f   : > { %v1088_v18 = vpop.xlane.xlu1 %1087  ;;  %v1118_v45 = vpop.xlane.xlu0 %1117  ;;  %v985_v37 = vadd.f32 %v2873_v4, %v825_v35 }
 0x3a0   : > { %v3084_v6 = vadd.f32 %v1088_v18, %v982_v29  ;;  %vm1174_vm7 = vcmp.ge.f32.partialorder %v3498_v20, %v1088_v18  ;;  %v3087_v40 = vadd.f32 %v1118_v45, %v997_v46  ;;  %vm1189_vm8 = vcmp.ge.f32.partialorder %v3499_v32, %v1118_v45  ;;  %v3512_v45 = vld [vmem:[#allocation22_spill] sm:$0xff] }
 0x3a1   : > { %v1206_v60 = vsel %vm1174_vm7, -inf, %v3498_v20  ;;  %v1221_v61 = vsel %vm1189_vm8, -inf, %v3499_v32  ;;  %v841_v29 = vadd.f32 %v3509_v57, %v3508_v54  ;;  %v986_v3 = vadd.f32 %v2887_v9, %v826_v7  ;;  %v3513_v20 = vld [vmem:[#allocation46_spill] sm:$0xff]  ;;  %v3521_v57 = vld [vmem:[#allocation3_spill] sm:$0xff] }
 0x3a2   : > { %1247 = vmax.xlane.f32.xlu1 %v1206_v60  ;;  %1277 = vmax.xlane.f32.xlu0 %v1221_v61  ;;  %v842_v32 = vadd.f32 %v3513_v20, %v3512_v45  ;;  %v1390_v62 = vshrl.u32 %v3520_v14, 7  ;;  %vm1543_vm7 = vcmask 1045509   ;;  %vm1545_vm8 = vcmask 1046534  }
 0x3a3   : > { %v1120_v47 = vpop.xlane.xlu1 %1119  ;;  %v1098_v28 = vpop.xlane.xlu0 %1097  ;;  %v1001_v18 = vadd.f32 %v2889_v8, %v841_v29  ;;  %v3516_v8 = vld [vmem:[#allocation71_spill] sm:$0xff]  ;;  %v1393_v29 = vadd.s32 4294967288, %v3521_v57 }
 0x3a4   : > { %v3098_v30 = vadd.f32 %v1120_v47, %v998_v21  ;;  %vm1190_vm9 = vcmp.ge.f32.partialorder %v3504_v24, %v1120_v47  ;;  %v3101_v39 = vadd.f32 %v1098_v28, %v987_v22  ;;  %vm1179_vm10 = vcmp.ge.f32.partialorder %v3505_v44, %v1098_v28  ;;  %v3514_v22 = vld [vmem:[#allocation69_spill] sm:$0xff] }
 0x3a5   : > { %v1222_v0 = vsel %vm1190_vm9, -inf, %v3504_v24  ;;  %v1211_v1 = vsel %vm1179_vm10, -inf, %v3505_v44  ;;  %v1002_v51 = vadd.f32 %v3516_v8, %v842_v32  ;;  %v3517_v28 = vld [vmem:[#allocation73_spill] sm:$0xff]  ;;  %v3518_v24 = vld [vmem:[#allocation74_spill] sm:$0xff]  ;;  %vm1547_vm9 = vcmask 1047559  }
 0x3a6   : > { %1279 = vmax.xlane.f32.xlu1 %v1222_v0  ;;  %1257 = vmax.xlane.f32.xlu0 %v1211_v1  ;;  %vm1558_vm10 = vcmask 130048  }
 0x3a7   : > { %v1100_v46 = vpop.xlane.xlu1 %1099  ;;  %v1094_v42 = vpop.xlane.xlu0 %1093 }
 0x3a8   : > { %v3112_v15 = vadd.f32 %v1100_v46, %v988_v31  ;;  %vm1180_vm11 = vcmp.ge.f32.partialorder %v3510_v56, %v1100_v46  ;;  %v3115_v43 = vadd.f32 %v1094_v42, %v985_v37  ;;  %vm1177_vm12 = vcmp.ge.f32.partialorder %v3511_v49, %v1094_v42  ;;  %v3519_v31 = vld [vmem:[#allocation76_spill] sm:$0xff] }
 0x3a9   : > { %v1212_v4 = vsel %vm1180_vm11, -inf, %v3510_v56  ;;  %v1209_v5 = vsel %vm1177_vm12, -inf, %v3511_v49  ;;  %v3151_v46 = vsub.s32 %v3521_v57, %v1390_v62  ;;  %vm1575_vm12 = vcmask 23552  }
 0x3aa   : > { %1259 = vmax.xlane.f32.xlu1 %v1212_v4  ;;  %1253 = vmax.xlane.f32.xlu0 %v1209_v5  ;;  %v3153_v4 = vsub.s32 %v1393_v29, %v1390_v62 }
 0x3ab   : > { %v1096_v60 = vpop.xlane.xlu1 %1095  ;;  %v1126_v61 = vpop.xlane.xlu0 %1125 }
 0x3ac   : > { %v3124_v21 = vadd.f32 %v1096_v60, %v986_v3  ;;  %vm1178_vm13 = vcmp.ge.f32.partialorder %v3514_v22, %v1096_v60  ;;  %v3127_v23 = vadd.f32 %v1126_v61, %v1001_v18  ;;  %vm1193_vm14 = vcmp.ge.f32.partialorder %v3515_v41, %v1126_v61 }
 0x3ad   : > { %v1210_v2 = vsel %vm1178_vm13, -inf, %v3514_v22  ;;  %v1225_v9 = vsel %vm1193_vm14, -inf, %v3515_v41 }
 0x3ae   : > { %1255 = vmax.xlane.f32.xlu1 %v1210_v2  ;;  %1285 = vmax.xlane.f32.xlu0 %v1225_v9 }
 0x3af   : > { %v1128_v53 = vpop.xlane.xlu1 %1127  ;;  %v3133_v35 = vpop.xlane.xlu0 %1129 }
 0x3b0   : > { %v3135_v47 = vadd.f32 %v1128_v53, %v1002_v51  ;;  %vm1194_vm15 = vcmp.ge.f32.partialorder %v3517_v28, %v1128_v53  ;;  %vm1195_vm0 = vcmp.ge.f32.partialorder %v3518_v24, %v3133_v35 }
 0x3b1   : > { %v1226_v44 = vsel %vm1194_vm15, -inf, %v3517_v28  ;;  %v1227_v0 = vsel %vm1195_vm0, -inf, %v3518_v24 }
 0x3b2   : > { %1287 = vmax.xlane.f32.xlu1 %v1226_v44  ;;  %1289 = vmax.xlane.f32.xlu0 %v1227_v0 }
 0x3b3   : > { %v3142_v1 = vpop.xlane.xlu1 %1131 }
 0x3b4   : > { %vm1196_vm1 = vcmp.ge.f32.partialorder %v3519_v31, %v3142_v1 }
 0x3b5   : > { %v1228_v37 = vsel %vm1196_vm1, -inf, %v3519_v31 }
 0x3b6   : > { %1291 = vmax.xlane.f32.xlu1 %v1228_v37 }
 0x403   : > { %v1234_v7 = vpop.xlane.xlu0 %1233 }
 0x404   : > { %v1295_v54 = vadd.f32 %v1234_v7, %v2934_v16 }
 0x406   : > { %v1327_v42 = vmul.f32 0.2, %v1295_v54 }
 0x407   : > { %v1236_v56 = vpop.xlane.xlu1 %1235  ;;  %v1266_v49 = vpop.xlane.xlu0 %1265 }
 0x408   : > { %v1296_v5 = vadd.f32 %v1236_v56, %v2944_v34  ;;  %v1311_v3 = vadd.f32 %v1266_v49, %v2947_v19  ;;  %v1403_v45 = vrot.slane %v1327_v42, %v3151_v46 }
 0x40a   : > { %v1328_v18 = vmul.f32 0.2, %v1296_v5  ;;  %v1343_v60 = vmul.f32 0.2, %v1311_v3 }
 0x40b   : > { %v1268_v20 = vpop.xlane.xlu1 %1267  ;;  %v1230_v16 = vpop.xlane.xlu0 %1229 }
 0x40c   : > { %v1407_v32 = vrot.slane %v1328_v18, %v3153_v4  ;;  %v1312_v61 = vadd.f32 %v1268_v20, %v2958_v12  ;;  %v1293_v22 = vadd.f32 %v1230_v16, %v2961_v25  ;;  %v1475_v19 = vrot.slane %v1343_v60, %v3151_v46 }
 0x40e   : > { %v1408_v41 = vsel %vm1398_vm2, %v1407_v32, %v1403_v45  ;;  %v1344_v2 = vmul.f32 0.2, %v1312_v61  ;;  %v1325_v9 = vmul.f32 0.2, %v1293_v22 }
 0x40f   : > { %v1232_v34 = vpop.xlane.xlu1 %1231  ;;  %v1262_v8 = vpop.xlane.xlu0 %1261 }
 0x410   : > { %v1479_v51 = vrot.slane %v1344_v2, %v3153_v4  ;;  %v1294_v53 = vadd.f32 %v1232_v34, %v2972_v17  ;;  %v1309_v28 = vadd.f32 %v1262_v8, %v2975_v33  ;;  %v1392_v12 = vrot.slane %v1325_v9, %v3151_v46 }
 0x412   : > { %v1480_v24 = vsel %vm1398_vm2, %v1479_v51, %v1475_v19  ;;  %v1326_v44 = vmul.f32 0.2, %v1294_v53  ;;  %v1341_v37 = vmul.f32 0.2, %v1309_v28 }
 0x413   : > { %v1264_v25 = vpop.xlane.xlu1 %1263  ;;  %v1242_v0 = vpop.xlane.xlu0 %1241 }
 0x414   : > { %v1397_v31 = vrot.slane %v1326_v44, %v3153_v4  ;;  %v1310_v14 = vadd.f32 %v1264_v25, %v2986_v63  ;;  %v1299_v62 = vadd.f32 %v1242_v0, %v2989_v38  ;;  %v1466_v56 = vrot.slane %v1341_v37, %v3151_v46 }
 0x416   : > { %v1399_v7 = vsel %vm1398_vm2, %v1397_v31, %v1392_v12  ;;  %v1342_v17 = vmul.f32 0.2, %v1310_v14  ;;  %v1331_v54 = vmul.f32 0.2, %v1299_v62 }
 0x417   : > { %v1536_v33 = vsel %vm1535_vm3, %v1408_v41, %v1399_v7  ;;  %v1244_v29 = vpop.xlane.xlu1 %1243  ;;  %v1274_v42 = vpop.xlane.xlu0 %1273 }
 0x418   : > { %v1470_v49 = vrot.slane %v1342_v17, %v3153_v4  ;;  %v1300_v5 = vadd.f32 %v1244_v29, %v3000_v36  ;;  %v1315_v3 = vadd.f32 %v1274_v42, %v3003_v59  ;;  %v1421_v45 = vrot.slane %v1331_v54, %v3151_v46 }
 0x41a   : > { %v1471_v63 = vsel %vm1398_vm2, %v1470_v49, %v1466_v56  ;;  %v1332_v18 = vmul.f32 0.2, %v1300_v5  ;;  %v1347_v60 = vmul.f32 0.2, %v1315_v3 }
 0x41b   : > { %v1549_v38 = vsel %vm1535_vm3, %v1480_v24, %v1471_v63  ;;  %v1276_v20 = vpop.xlane.xlu1 %1275  ;;  %v1238_v16 = vpop.xlane.xlu0 %1237 }
 0x41c   : > { %v1425_v32 = vrot.slane %v1332_v18, %v3153_v4  ;;  %v1316_v61 = vadd.f32 %v1276_v20, %v3014_v48  ;;  %v1297_v22 = vadd.f32 %v1238_v16, %v3017_v11  ;;  %v1493_v34 = vrot.slane %v1347_v60, %v3151_v46 }
 0x41e   : > { %v1426_v36 = vsel %vm1398_vm2, %v1425_v32, %v1421_v45  ;;  %v1348_v41 = vmul.f32 0.2, %v1316_v61  ;;  %v1329_v59 = vmul.f32 0.2, %v1297_v22 }
 0x41f   : > { %v1240_v2 = vpop.xlane.xlu1 %1239  ;;  %v1270_v9 = vpop.xlane.xlu0 %1269 }
 0x420   : > { %v1497_v8 = vrot.slane %v1348_v41, %v3153_v4  ;;  %v1298_v19 = vadd.f32 %v1240_v2, %v3028_v58  ;;  %v1313_v51 = vadd.f32 %v1270_v9, %v3031_v55  ;;  %v1412_v48 = vrot.slane %v1329_v59, %v3151_v46 }
 0x422   : > { %v1498_v53 = vsel %vm1398_vm2, %v1497_v8, %v1493_v34  ;;  %v1330_v28 = vmul.f32 0.2, %v1298_v19  ;;  %v1345_v12 = vmul.f32 0.2, %v1313_v51 }
 0x423   : > { %v1272_v11 = vpop.xlane.xlu1 %1271  ;;  %v1250_v24 = vpop.xlane.xlu0 %1249 }
 0x424   : > { %v1416_v44 = vrot.slane %v1330_v28, %v3153_v4  ;;  %v1314_v25 = vadd.f32 %v1272_v11, %v3042_v10  ;;  %v1303_v0 = vadd.f32 %v1250_v24, %v3045_v13  ;;  %v1484_v7 = vrot.slane %v1345_v12, %v3151_v46 }
 0x426   : > { %v1417_v31 = vsel %vm1398_vm2, %v1416_v44, %v1412_v48  ;;  %v1346_v58 = vmul.f32 0.2, %v1314_v25  ;;  %v1335_v37 = vmul.f32 0.2, %v1303_v0  ;;  %v3523_v25 = vld [vmem:[#allocation47_spill] sm:$0xff] }
 0x427   : > { %v1538_v55 = vsel %vm1537_vm4, %v1417_v31, %v1536_v33  ;;  %v1252_v14 = vpop.xlane.xlu1 %1251  ;;  %v1282_v62 = vpop.xlane.xlu0 %1281 }
 0x428   : > { %v1488_v17 = vrot.slane %v1346_v58, %v3153_v4  ;;  %v1304_v54 = vadd.f32 %v1252_v14, %v3056_v26  ;;  %v1319_v29 = vadd.f32 %v1282_v62, %v3059_v50  ;;  %v1540_v10 = vsel %vm1539_vm5, %v1426_v36, %v1538_v55  ;;  %v3524_v55 = vld [vmem:[#allocation72_spill] sm:$0xff] }
 0x429   : > { %v1439_v33 = vrot.slane %v1335_v37, %v3151_v46 }
 0x42a   : > { %v1489_v13 = vsel %vm1398_vm2, %v1488_v17, %v1484_v7  ;;  %v1336_v42 = vmul.f32 0.2, %v1304_v54  ;;  %v1351_v63 = vmul.f32 0.2, %v1319_v29 }
 0x42b   : > { %v1550_v56 = vsel %vm1537_vm4, %v1489_v13, %v1549_v38  ;;  %v1284_v49 = vpop.xlane.xlu1 %1283  ;;  %v1246_v5 = vpop.xlane.xlu0 %1245  ;;  %v3526_v13 = vld [vmem:[#allocation48_spill] sm:$0xff] }
 0x42c   : > { %v1443_v3 = vrot.slane %v1336_v42, %v3153_v4  ;;  %v1320_v18 = vadd.f32 %v1284_v49, %v3070_v27  ;;  %v1301_v26 = vadd.f32 %v1246_v5, %v3073_v52  ;;  %v1551_v50 = vsel %vm1539_vm5, %v1498_v53, %v1550_v56 }
 0x42d   : > { %v1511_v38 = vrot.slane %v1351_v63, %v3151_v46 }
 0x42e   : > { %v1444_v45 = vsel %vm1398_vm2, %v1443_v3, %v1439_v33  ;;  %v1352_v20 = vmul.f32 0.2, %v1320_v18  ;;  %v1333_v16 = vmul.f32 0.2, %v1301_v26  ;;  %v3527_v3 = vld [vmem:[#allocation75_spill] sm:$0xff] }
 0x42f   : > { %v1248_v32 = vpop.xlane.xlu1 %1247  ;;  %v1278_v60 = vpop.xlane.xlu0 %1277 }
 0x430   : > { %v1515_v61 = vrot.slane %v1352_v20, %v3153_v4  ;;  %v1302_v22 = vadd.f32 %v1248_v32, %v3084_v6  ;;  %v1317_v36 = vadd.f32 %v1278_v60, %v3087_v40  ;;  %v1430_v52 = vrot.slane %v1333_v16, %v3151_v46 }
 0x432   : > { %v1516_v27 = vsel %vm1398_vm2, %v1515_v61, %v1511_v38  ;;  %v1334_v41 = vmul.f32 0.2, %v1302_v22  ;;  %v1349_v34 = vmul.f32 0.2, %v1317_v36 }
 0x433   : > { %v1280_v59 = vpop.xlane.xlu1 %1279  ;;  %v1258_v2 = vpop.xlane.xlu0 %1257 }
 0x434   : > { %v1434_v9 = vrot.slane %v1334_v41, %v3153_v4  ;;  %v1318_v8 = vadd.f32 %v1280_v59, %v3098_v30  ;;  %v1307_v19 = vadd.f32 %v1258_v2, %v3101_v39  ;;  %v1502_v11 = vrot.slane %v1349_v34, %v3151_v46  ;;  %v3522_v30 = vld [vmem:[#allocation25_spill] sm:$0xff] }
 0x435   : > { %v843_v39 = vadd.f32 %v3523_v25, %v3522_v30 }
 0x436   : > { %v1435_v51 = vsel %vm1398_vm2, %v1434_v9, %v1430_v52  ;;  %v1350_v6 = vmul.f32 0.2, %v1318_v8  ;;  %v1339_v40 = vmul.f32 0.2, %v1307_v19 }
 0x437   : > { %v1260_v53 = vpop.xlane.xlu1 %1259  ;;  %v1254_v28 = vpop.xlane.xlu0 %1253  ;;  %v1542_v48 = vsel %vm1541_vm6, %v1435_v51, %v1540_v10  ;;  %v1003_v37 = vadd.f32 %v3524_v55, %v843_v39  ;;  %v3525_v10 = vld [vmem:[#allocation24_spill] sm:$0xff]  ;;  %v1565_v51 = vstv %s1915_s9 }
 0x438   : > { %v1506_v24 = vrot.slane %v1350_v6, %v3153_v4  ;;  %v1308_v44 = vadd.f32 %v1260_v53, %v3112_v15  ;;  %v1305_v12 = vadd.f32 %v1254_v28, %v3115_v43  ;;  %v1544_v0 = vsel %vm1543_vm7, %v1444_v45, %v1542_v48  ;;  %v1567_v53 = vld [vmem:[#allocation2] sm:$0xff] }
 0x439   : > { %v1457_v14 = vrot.slane %v1339_v40, %v3151_v46  ;;  %v844_v42 = vadd.f32 %v3526_v13, %v3525_v10  ;;  %v1163_v33 = vadd.f32 %v3133_v35, %v1003_v37  ;;  %vm1566_vm11 = vcmp.eq.s32.totalorder %v3521_v57, %v1565_v51 }
 0x43a   : > { %v1507_v31 = vsel %vm1398_vm2, %v1506_v24, %v1502_v11  ;;  %v1340_v58 = vmul.f32 0.2, %v1308_v44  ;;  %v1337_v54 = vmul.f32 0.2, %v1305_v12  ;;  %v1935_v6 = vmov 0.0  }
 0x43b   : > { %v1256_v62 = vpop.xlane.xlu1 %1255  ;;  %v1286_v7 = vpop.xlane.xlu0 %1285  ;;  %v1552_v17 = vsel %vm1541_vm6, %v1507_v31, %v1551_v50  ;;  %v1004_v63 = vadd.f32 %v3527_v3, %v844_v42  ;;  %v1732_v40 = vsel %vm1566_vm11, 1.0, %v1935_v6 }
 0x43c   : > { %v1461_v15 = vrot.slane %v1340_v58, %v3153_v4  ;;  %v1306_v43 = vadd.f32 %v1256_v62, %v3124_v21  ;;  %v1321_v29 = vadd.f32 %v1286_v7, %v3127_v23  ;;  %v1553_v56 = vsel %vm1543_vm7, %v1516_v27, %v1552_v17 }
 0x43d   : > { %v1448_v21 = vrot.slane %v1337_v54, %v3151_v46  ;;  %v1164_v16 = vadd.f32 %v3142_v1, %v1004_v63 }
 0x43e   : > { %v1338_v49 = vmul.f32 0.2, %v1306_v43  ;;  %v1462_v5 = vsel %vm1398_vm2, %v1461_v15, %v1457_v14  ;;  %v1353_v18 = vmul.f32 0.2, %v1321_v29 }
 0x43f   : > { %v1288_v26 = vpop.xlane.xlu1 %1287  ;;  %v1290_v50 = vpop.xlane.xlu0 %1289 }
 0x440   : > { %v1452_v23 = vrot.slane %v1338_v49, %v3153_v4  ;;  %v1322_v45 = vadd.f32 %v1288_v26, %v3135_v47  ;;  %v1323_v20 = vadd.f32 %v1290_v50, %v1163_v33  ;;  %v1520_v60 = vrot.slane %v1353_v18, %v3151_v46 }
 0x442   : > { %v1354_v35 = vmul.f32 0.2, %v1322_v45  ;;  %v1453_v32 = vsel %vm1398_vm2, %v1452_v23, %v1448_v21  ;;  %v1355_v36 = vmul.f32 0.2, %v1323_v20 }
 0x443   : > { %v1292_v38 = vpop.xlane.xlu1 %1291  ;;  %v1546_v61 = vsel %vm1545_vm8, %v1453_v32, %v1544_v0 }
 0x444   : > { %v1524_v22 = vrot.slane %v1354_v35, %v3153_v4  ;;  %v1324_v27 = vadd.f32 %v1292_v38, %v1164_v16  ;;  %v1548_v47 = vsel %vm1547_vm9, %v1462_v5, %v1546_v61  ;;  %v1529_v2 = vrot.slane %v1355_v36, %v3151_v46 }
 0x445   : > { %v1559_v41 = vsel %vm1558_vm10, %v1548_v47, 0.0 }
 0x446   : > { %v1356_v52 = vmul.f32 0.2, %v1324_v27  ;;  %1560 = vadd.xlane.f32.xlu0 %v1559_v41  ;;  %v1525_v1 = vsel %vm1398_vm2, %v1524_v22, %v1520_v60 }
 0x447   : > { %v1554_v59 = vsel %vm1545_vm8, %v1525_v1, %v1553_v56 }
 0x448   : > { %v1533_v9 = vrot.slane %v1356_v52, %v3153_v4  ;;  %v1568_v4 = vld [vmem:[#allocation2 + $0x8] sm:$0xff] }
 0x44a   : > { %v1534_v34 = vsel %vm1398_vm2, %v1533_v9, %v1529_v2 }
 0x44b   : > { %v1555_v8 = vsel %vm1547_vm9, %v1534_v34, %v1554_v59 }
 0x44c   : > { %v1562_v19 = vsel %vm1558_vm10, %v1555_v8, 0.0 }
 0x44d   : > { %1563 = vadd.xlane.f32.xlu1 %v1562_v19 }
 0x4d3   : > { %v1561_v28 = vpop.xlane.xlu0 %1560 }
 0x4d4   : > { %v1571_v48 = vmul.f32 %v1732_v40, %v1561_v28 }
 0x4d6   : > { %v1573_v46 = vadd.f32 %v1571_v48, %v1567_v53 }
 0x4d8   : > { %1576 = vst.msk [vmem:[#allocation2] sm:$0xff] %vm1575_vm12, %v1573_v46 }
 0x4da   : > { %v1564_v11 = vpop.xlane.xlu1 %1563 }
 0x4db   : > { %v1572_v24 = vmul.f32 %v1732_v40, %v1564_v11 }
 0x4dd   : > { %v1574_v44 = vadd.f32 %v1572_v24, %v1568_v4 }
 0x4df   : > { %v1578_v12 = vld [vmem:[#allocation2] sm:$0xff]  ;;  %1577 = vst.msk [vmem:[#allocation2 + $0x8] sm:$0xff] %vm1575_vm12, %v1574_v44 }
 0x4e0   : > { %1580 = vst.msk [vmem:[%s1993_s28] sm:$0xff] %vm1575_vm12, %v1578_v12 }
 0x4e6   : > { %v1579_v30 = vld [vmem:[#allocation2 + $0x8] sm:$0xff] }
 0x4e7   : > { %1581 = vst.msk [vmem:[%s1993_s28 + $0x8] sm:$0xff] %vm1575_vm12, %v1579_v30 }
 0x4e8 PF: > { %s12_s13 = sadd.s32 1, %s1931_s13   ;;  %s3528_s9 = smov %s1923_s11 }
 0x4e9   : > { %p9_p8 = scmp.ge.s32.totalorder %s12_s13, 8   ;;  %s3529_s10 = smov %s1927_s12 }
 0x4ea   : > { %s3530_s11 = smov %s3533_s14  ;;  %s3531_s12 = smov %s3537_s15 }
 0x4eb   :  { %11 = sbr.rel (!%p9_p8) target bundleno = 3 (0x3), region = 65 }

</bundles_post_ra>
